<compile_context>
chip_gen: v6e
topology: v6e:2x2x1
jax: 0.10.0
libtpu: 0.0.40
codegen_flags: <defaults>
</compile_context>

<pallas_src>
import functools

import jax
import jax.numpy as jnp
from jax import lax
from jax.experimental import pallas as pl
from jax.experimental.pallas import tpu as pltpu


def lstm_only_kernel(x_ref,                       # (T*Bp, D)
                     wih1_ref, whh1_ref, b1_ref,  # (D, 4H1), (H1, 4H1), (1, 4H1)  [i,f,o,g]
                     w2_ref, b2_ref,              # (H1+H2, 4H2), (1, 4H2)         [i,f,o,g]
                     wfc1_ref, bfc1_ref,          # (H2, F1), (1, F1)
                     wfc2_ref, bfc2_ref,          # (F1, C), (1, C)
                     out_ref,                     # (Bp, C)
                     xproj_ref,                   # scratch (T*Bp, 4H1)
                     *, T, Bp):
    H1 = whh1_ref.shape[0]
    H2 = b2_ref.shape[1] // 4

    # Load loop-invariant weights once (live in vregs across the recurrence).
    whh1 = whh1_ref[...]
    w2 = w2_ref[...]
    b2 = b2_ref[...]

    # Hoisted input projection for lstm1: one big matmul, bias folded in.
    # Removes one dependent MXU round-trip + one VPU add per step from the
    # serial h_{t-1} -> h_t critical path.
    xproj_ref[...] = (jnp.dot(x_ref[...], wih1_ref[...],
                              preferred_element_type=jnp.float32)
                      + b1_ref[...])

    def act(gates, H):
        # Packed gate order [i, f, o, g]: one sigmoid over 3H contiguous lanes,
        # one tanh over the last H lanes (2 EUP pushes per cell instead of 4).
        s = jax.nn.sigmoid(gates[:, :3 * H])
        return s[:, :H], s[:, H:2 * H], s[:, 2 * H:3 * H], jnp.tanh(gates[:, 3 * H:])

    def step(t, carry):
        h1, c1, h2, c2 = carry
        # lstm1: only the recurrent matmul remains on the critical path.
        off = pl.multiple_of(t * Bp, Bp)
        g1 = xproj_ref[pl.ds(off, Bp), :] + jnp.dot(
            h1, whh1, preferred_element_type=jnp.float32)
        i1, f1, o1, gg1 = act(g1, H1)
        c1 = f1 * c1 + i1 * gg1
        h1 = o1 * jnp.tanh(c1)
        # lstm2: fused input + recurrent matmul on concat([h1, h2]).
        g2 = jnp.dot(jnp.concatenate([h1, h2], axis=-1), w2,
                     preferred_element_type=jnp.float32) + b2
        i2, f2, o2, gg2 = act(g2, H2)
        c2 = f2 * c2 + i2 * gg2
        h2 = o2 * jnp.tanh(c2)
        return (h1, c1, h2, c2)

    carry0 = (jnp.zeros((Bp, H1), jnp.float32), jnp.zeros((Bp, H1), jnp.float32),
              jnp.zeros((Bp, H2), jnp.float32), jnp.zeros((Bp, H2), jnp.float32))
    # Short static trip count: fully unroll for cross-iteration scheduling.
    _, _, h2_T, _ = lax.fori_loop(0, T, step, carry0, unroll=True)

    # Dropout layers are identity at inference.
    dense = jnp.dot(h2_T, wfc1_ref[...], preferred_element_type=jnp.float32) + bfc1_ref[...]
    logits = jnp.dot(dense, wfc2_ref[...], preferred_element_type=jnp.float32) + bfc2_ref[...]
    out_ref[...] = logits.astype(out_ref.dtype)


def _permute_ifog(w, H):
    # Gate blocks of width H in PyTorch order [i | f | g | o]  ->  [i | f | o | g].
    return jnp.concatenate(
        [w[..., :2 * H], w[..., 3 * H:4 * H], w[..., 2 * H:3 * H]], axis=-1)


def lstm_only_model_forward(x, params):
    """x: (B, T, D) float32.  Returns logits (B, num_classes)."""
    B, T, D = x.shape
    H1 = params["whh1_t"].shape[0]
    H2 = params["whh2_t"].shape[0]
    C = params["wfc2_t"].shape[1]

    # Pad batch to a full sublane group so every vreg row is occupied;
    # wrapper-side transpose/reshape/pad is XLA layout plumbing (not on the
    # kernel's serial path).
    Bp = ((B + 7) // 8) * 8
    xt = jnp.transpose(x, (1, 0, 2)).astype(jnp.float32)      # (T, B, D)
    xt = jnp.pad(xt, ((0, 0), (0, Bp - B), (0, 0)))           # (T, Bp, D)
    x2d = xt.reshape(T * Bp, D)                               # (T*Bp, D)

    # Zero-runtime-cost weight packing: gate-column permutation + lstm2 fusion.
    wih1 = _permute_ifog(params["wih1_t"], H1)
    whh1 = _permute_ifog(params["whh1_t"], H1)
    b1 = _permute_ifog(params["b1"], H1)
    w2 = jnp.concatenate([_permute_ifog(params["wih2_t"], H2),
                          _permute_ifog(params["whh2_t"], H2)], axis=0)
    b2 = _permute_ifog(params["b2"], H2)

    args = (x2d, wih1, whh1, b1, w2, b2,
            params["wfc1_t"], params["bfc1"], params["wfc2_t"], params["bfc2"])

    # Whole-array VMEM residency (~70 KB total) — no grid / BlockSpec tiling;
    # any grid would add per-step overhead with zero pipelining benefit here.
    # TODO(synk): if serving many sequences on v7x, add a batch-shard grid axis
    # marked "parallel" so both TensorCores are used.
    vmem = pl.BlockSpec(memory_space=pltpu.MemorySpace.VMEM)
    out = pl.pallas_call(
        functools.partial(lstm_only_kernel, T=T, Bp=Bp),
        out_shape=jax.ShapeDtypeStruct((Bp, C), jnp.float32),
        in_specs=[vmem] * len(args),
        out_specs=vmem,
        scratch_shapes=[pltpu.VMEM((T * Bp, 4 * H1), jnp.float32)],
    )(*args)
    return out[:B]


def init_params(key, input_dim, hidden, num_classes):
    """Deterministic synthetic init mirroring the PyTorch module's shapes.
    Weights are stored transposed (for x @ W) with PyTorch gate order [i,f,g,o];
    LSTM biases are pre-summed (b_ih + b_hh)."""
    H1 = hidden
    H2 = hidden // 2
    F1 = H2 // 2
    ks = jax.random.split(key, 12)

    def u(k, shape, bound):
        return jax.random.uniform(k, shape, jnp.float32, -bound, bound)

    k1 = 1.0 / jnp.sqrt(H1)
    k2 = 1.0 / jnp.sqrt(H2)
    wih1_t = u(ks[0], (input_dim, 4 * H1), k1)
    whh1_t = u(ks[1], (H1, 4 * H1), k1)
    b1 = u(ks[2], (1, 4 * H1), k1) + u(ks[3], (1, 4 * H1), k1)
    wih2_t = u(ks[4], (H1, 4 * H2), k2)
    whh2_t = u(ks[5], (H2, 4 * H2), k2)
    b2 = u(ks[6], (1, 4 * H2), k2) + u(ks[7], (1, 4 * H2), k2)
    kf1 = 1.0 / jnp.sqrt(H2)
    kf2 = 1.0 / jnp.sqrt(F1)
    wfc1_t = u(ks[8], (H2, F1), kf1)
    bfc1 = u(ks[9], (1, F1), kf1)
    wfc2_t = u(ks[10], (F1, num_classes), kf2)
    bfc2 = u(ks[11], (1, num_classes), kf2)
    return dict(wih1_t=wih1_t, whh1_t=whh1_t, b1=b1,
                wih2_t=wih2_t, whh2_t=whh2_t, b2=b2,
                wfc1_t=wfc1_t, bfc1=bfc1, wfc2_t=wfc2_t, bfc2=bfc2)


def reference_forward(x, p):
    """Pure-JAX reference (standard PyTorch gate order) for validation."""
    B, T, D = x.shape
    H1 = p["whh1_t"].shape[0]
    H2 = p["whh2_t"].shape[0]

    def cell(x_t, h, c, wih, whh, b, H):
        g = x_t @ wih + h @ whh + b
        i = jax.nn.sigmoid(g[:, :H]); f = jax.nn.sigmoid(g[:, H:2 * H])
        gg = jnp.tanh(g[:, 2 * H:3 * H]); o = jax.nn.sigmoid(g[:, 3 * H:])
        c = f * c + i * gg
        return o * jnp.tanh(c), c

    h1 = jnp.zeros((B, H1)); c1 = jnp.zeros((B, H1))
    h2 = jnp.zeros((B, H2)); c2 = jnp.zeros((B, H2))
    for t in range(T):
        h1, c1 = cell(x[:, t, :], h1, c1, p["wih1_t"], p["whh1_t"], p["b1"], H1)
        h2, c2 = cell(h1, h2, c2, p["wih2_t"], p["whh2_t"], p["b2"], H2)
    dense = h2 @ p["wfc1_t"] + p["bfc1"]
    return dense @ p["wfc2_t"] + p["bfc2"]


if __name__ == "__main__":
    B, T, D = 2, 8, 16           # batch, sequence_length, input_feature_dim
    hidden = 32                  # lstm_hidden_size
    num_classes = 5

    key = jax.random.PRNGKey(0)
    kx, kp = jax.random.split(key)
    x = jax.random.normal(kx, (B, T, D), jnp.float32)
    params = init_params(kp, D, hidden, num_classes)

    logits = lstm_only_model_forward(x, params)
    logits = jax.block_until_ready(logits)

    ref = reference_forward(x, params)
    assert logits.shape == (B, num_classes)
    assert jnp.allclose(logits, ref, atol=2e-3, rtol=2e-3)

    print("KERNEL_OK")
</pallas_src>

<mosaic_0001>
module attributes {stable_mosaic.version = 11 : i64} {
  func.func @lstm_only_kernel(%arg0: memref<64x16xf32, #tpu.memory_space<vmem>>, %arg1: memref<16x128xf32, #tpu.memory_space<vmem>>, %arg2: memref<32x128xf32, #tpu.memory_space<vmem>>, %arg3: memref<1x128xf32, #tpu.memory_space<vmem>>, %arg4: memref<48x64xf32, #tpu.memory_space<vmem>>, %arg5: memref<1x64xf32, #tpu.memory_space<vmem>>, %arg6: memref<16x8xf32, #tpu.memory_space<vmem>>, %arg7: memref<1x8xf32, #tpu.memory_space<vmem>>, %arg8: memref<8x5xf32, #tpu.memory_space<vmem>>, %arg9: memref<1x5xf32, #tpu.memory_space<vmem>>, %arg10: memref<8x5xf32, #tpu.memory_space<vmem>>, %arg11: memref<64x128xf32, #tpu.memory_space<vmem>>) attributes {dimension_semantics = [], scalar_prefetch = 0 : i64, scratch_operands = 1 : i64, tpu.core_type = #tpu.core_type<tc>} {
    %c0 = arith.constant 0 : index
    %c0_0 = arith.constant 0 : index
    %0 = vector.load %arg2[%c0, %c0_0] : memref<32x128xf32, #tpu.memory_space<vmem>>, vector<32x128xf32>
    %c0_1 = arith.constant 0 : index
    %c0_2 = arith.constant 0 : index
    %1 = vector.load %arg4[%c0_1, %c0_2] : memref<48x64xf32, #tpu.memory_space<vmem>>, vector<48x64xf32>
    %c0_3 = arith.constant 0 : index
    %c0_4 = arith.constant 0 : index
    %2 = vector.load %arg5[%c0_3, %c0_4] : memref<1x64xf32, #tpu.memory_space<vmem>>, vector<1x64xf32>
    %c0_5 = arith.constant 0 : index
    %c0_6 = arith.constant 0 : index
    %3 = vector.load %arg0[%c0_5, %c0_6] : memref<64x16xf32, #tpu.memory_space<vmem>>, vector<64x16xf32>
    %c0_7 = arith.constant 0 : index
    %c0_8 = arith.constant 0 : index
    %4 = vector.load %arg1[%c0_7, %c0_8] : memref<16x128xf32, #tpu.memory_space<vmem>>, vector<16x128xf32>
    %cst = arith.constant dense<0.000000e+00> : vector<64x128xf32>
    %5 = tpu.matmul %3, %4, %cst {dimension_numbers = #tpu.dot_dimension_numbers<[1], [0], [0], [1], [0, 0, 1, 1], [], []>} : vector<64x16xf32>, vector<16x128xf32>, vector<64x128xf32> -> vector<64x128xf32>
    %c0_9 = arith.constant 0 : index
    %c0_10 = arith.constant 0 : index
    %6 = vector.load %arg3[%c0_9, %c0_10] : memref<1x128xf32, #tpu.memory_space<vmem>>, vector<1x128xf32>
    %7 = vector.broadcast %6 : vector<1x128xf32> to vector<64x128xf32>
    %8 = arith.addf %5, %7 : vector<64x128xf32>
    %c0_11 = arith.constant 0 : index
    %c0_12 = arith.constant 0 : index
    %9 = vector.load %arg11[%c0_11, %c0_12] : memref<64x128xf32, #tpu.memory_space<vmem>>, vector<64x128xf32>
    tpu.vector_store %arg11[%c0_11, %c0_12], %8 {strides = array<i32>} : memref<64x128xf32, #tpu.memory_space<vmem>>, vector<64x128xf32>,
    %cst_13 = arith.constant 0.000000e+00 : f32
    %10 = vector.broadcast %cst_13 : f32 to vector<8x32xf32>
    %cst_14 = arith.constant 0.000000e+00 : f32
    %11 = vector.broadcast %cst_14 : f32 to vector<8x32xf32>
    %cst_15 = arith.constant 0.000000e+00 : f32
    %12 = vector.broadcast %cst_15 : f32 to vector<8x16xf32>
    %cst_16 = arith.constant 0.000000e+00 : f32
    %13 = vector.broadcast %cst_16 : f32 to vector<8x16xf32>
    %c0_i32 = arith.constant 0 : i32
    %c8_i32 = arith.constant 8 : i32
    %14 = arith.muli %c0_i32, %c8_i32 : i32
    %15 = tpu.assume_multiple %14, 8 : i32
    %16 = arith.index_cast %15 : i32 to index
    %c0_17 = arith.constant 0 : index
    %17 = vector.load %arg11[%16, %c0_17] : memref<64x128xf32, #tpu.memory_space<vmem>>, vector<8x128xf32>
    %cst_18 = arith.constant dense<0.000000e+00> : vector<8x128xf32>
    %18 = tpu.matmul %10, %0, %cst_18 {dimension_numbers = #tpu.dot_dimension_numbers<[1], [0], [0], [1], [0, 0, 1, 1], [], []>} : vector<8x32xf32>, vector<32x128xf32>, vector<8x128xf32> -> vector<8x128xf32>
    %19 = arith.addf %17, %18 : vector<8x128xf32>
    %20 = vector.extract_strided_slice %19 {offsets = [0, 0], sizes = [8, 96], strides = [1, 1]} : vector<8x128xf32> to vector<8x96xf32>
    %21 = arith.negf %20 : vector<8x96xf32>
    %22 = math.exp %21 : vector<8x96xf32>
    %cst_19 = arith.constant 1.000000e+00 : f32
    %23 = vector.broadcast %cst_19 : f32 to vector<8x96xf32>
    %24 = arith.addf %23, %22 : vector<8x96xf32>
    %25 = arith.divf %23, %24 : vector<8x96xf32>
    %26 = vector.extract_strided_slice %25 {offsets = [0, 0], sizes = [8, 32], strides = [1, 1]} : vector<8x96xf32> to vector<8x32xf32>
    %27 = vector.extract_strided_slice %25 {offsets = [0, 32], sizes = [8, 32], strides = [1, 1]} : vector<8x96xf32> to vector<8x32xf32>
    %28 = vector.extract_strided_slice %25 {offsets = [0, 64], sizes = [8, 32], strides = [1, 1]} : vector<8x96xf32> to vector<8x32xf32>
    %29 = vector.extract_strided_slice %19 {offsets = [0, 96], sizes = [8, 32], strides = [1, 1]} : vector<8x128xf32> to vector<8x32xf32>
    %30 = math.tanh %29 : vector<8x32xf32>
    %31 = arith.mulf %27, %11 : vector<8x32xf32>
    %32 = arith.mulf %26, %30 : vector<8x32xf32>
    %33 = arith.addf %31, %32 : vector<8x32xf32>
    %34 = math.tanh %33 : vector<8x32xf32>
    %35 = arith.mulf %28, %34 : vector<8x32xf32>
    %36 = tpu.concatenate %35, %12 in 1 : vector<8x32xf32>, vector<8x16xf32> -> vector<8x48xf32>
    %cst_20 = arith.constant dense<0.000000e+00> : vector<8x64xf32>
    %37 = tpu.matmul %36, %1, %cst_20 {dimension_numbers = #tpu.dot_dimension_numbers<[1], [0], [0], [1], [0, 0, 1, 1], [], []>} : vector<8x48xf32>, vector<48x64xf32>, vector<8x64xf32> -> vector<8x64xf32>
    %38 = vector.broadcast %2 : vector<1x64xf32> to vector<8x64xf32>
    %39 = arith.addf %37, %38 : vector<8x64xf32>
    %40 = vector.extract_strided_slice %39 {offsets = [0, 0], sizes = [8, 48], strides = [1, 1]} : vector<8x64xf32> to vector<8x48xf32>
    %41 = arith.negf %40 : vector<8x48xf32>
    %42 = math.exp %41 : vector<8x48xf32>
    %cst_21 = arith.constant 1.000000e+00 : f32
    %43 = vector.broadcast %cst_21 : f32 to vector<8x48xf32>
    %44 = arith.addf %43, %42 : vector<8x48xf32>
    %45 = arith.divf %43, %44 : vector<8x48xf32>
    %46 = vector.extract_strided_slice %45 {offsets = [0, 0], sizes = [8, 16], strides = [1, 1]} : vector<8x48xf32> to vector<8x16xf32>
    %47 = vector.extract_strided_slice %45 {offsets = [0, 16], sizes = [8, 16], strides = [1, 1]} : vector<8x48xf32> to vector<8x16xf32>
    %48 = vector.extract_strided_slice %45 {offsets = [0, 32], sizes = [8, 16], strides = [1, 1]} : vector<8x48xf32> to vector<8x16xf32>
    %49 = vector.extract_strided_slice %39 {offsets = [0, 48], sizes = [8, 16], strides = [1, 1]} : vector<8x64xf32> to vector<8x16xf32>
    %50 = math.tanh %49 : vector<8x16xf32>
    %51 = arith.mulf %47, %13 : vector<8x16xf32>
    %52 = arith.mulf %46, %50 : vector<8x16xf32>
    %53 = arith.addf %51, %52 : vector<8x16xf32>
    %54 = math.tanh %53 : vector<8x16xf32>
    %55 = arith.mulf %48, %54 : vector<8x16xf32>
    %c1_i32 = arith.constant 1 : i32
    %c8_i32_22 = arith.constant 8 : i32
    %56 = arith.muli %c1_i32, %c8_i32_22 : i32
    %57 = tpu.assume_multiple %56, 8 : i32
    %58 = arith.index_cast %57 : i32 to index
    %c0_23 = arith.constant 0 : index
    %59 = vector.load %arg11[%58, %c0_23] : memref<64x128xf32, #tpu.memory_space<vmem>>, vector<8x128xf32>
    %cst_24 = arith.constant dense<0.000000e+00> : vector<8x128xf32>
    %60 = tpu.matmul %35, %0, %cst_24 {dimension_numbers = #tpu.dot_dimension_numbers<[1], [0], [0], [1], [0, 0, 1, 1], [], []>} : vector<8x32xf32>, vector<32x128xf32>, vector<8x128xf32> -> vector<8x128xf32>
    %61 = arith.addf %59, %60 : vector<8x128xf32>
    %62 = vector.extract_strided_slice %61 {offsets = [0, 0], sizes = [8, 96], strides = [1, 1]} : vector<8x128xf32> to vector<8x96xf32>
    %63 = arith.negf %62 : vector<8x96xf32>
    %64 = math.exp %63 : vector<8x96xf32>
    %cst_25 = arith.constant 1.000000e+00 : f32
    %65 = vector.broadcast %cst_25 : f32 to vector<8x96xf32>
    %66 = arith.addf %65, %64 : vector<8x96xf32>
    %67 = arith.divf %65, %66 : vector<8x96xf32>
    %68 = vector.extract_strided_slice %67 {offsets = [0, 0], sizes = [8, 32], strides = [1, 1]} : vector<8x96xf32> to vector<8x32xf32>
    %69 = vector.extract_strided_slice %67 {offsets = [0, 32], sizes = [8, 32], strides = [1, 1]} : vector<8x96xf32> to vector<8x32xf32>
    %70 = vector.extract_strided_slice %67 {offsets = [0, 64], sizes = [8, 32], strides = [1, 1]} : vector<8x96xf32> to vector<8x32xf32>
    %71 = vector.extract_strided_slice %61 {offsets = [0, 96], sizes = [8, 32], strides = [1, 1]} : vector<8x128xf32> to vector<8x32xf32>
    %72 = math.tanh %71 : vector<8x32xf32>
    %73 = arith.mulf %69, %33 : vector<8x32xf32>
    %74 = arith.mulf %68, %72 : vector<8x32xf32>
    %75 = arith.addf %73, %74 : vector<8x32xf32>
    %76 = math.tanh %75 : vector<8x32xf32>
    %77 = arith.mulf %70, %76 : vector<8x32xf32>
    %78 = tpu.concatenate %77, %55 in 1 : vector<8x32xf32>, vector<8x16xf32> -> vector<8x48xf32>
    %cst_26 = arith.constant dense<0.000000e+00> : vector<8x64xf32>
    %79 = tpu.matmul %78, %1, %cst_26 {dimension_numbers = #tpu.dot_dimension_numbers<[1], [0], [0], [1], [0, 0, 1, 1], [], []>} : vector<8x48xf32>, vector<48x64xf32>, vector<8x64xf32> -> vector<8x64xf32>
    %80 = vector.broadcast %2 : vector<1x64xf32> to vector<8x64xf32>
    %81 = arith.addf %79, %80 : vector<8x64xf32>
    %82 = vector.extract_strided_slice %81 {offsets = [0, 0], sizes = [8, 48], strides = [1, 1]} : vector<8x64xf32> to vector<8x48xf32>
    %83 = arith.negf %82 : vector<8x48xf32>
    %84 = math.exp %83 : vector<8x48xf32>
    %cst_27 = arith.constant 1.000000e+00 : f32
    %85 = vector.broadcast %cst_27 : f32 to vector<8x48xf32>
    %86 = arith.addf %85, %84 : vector<8x48xf32>
    %87 = arith.divf %85, %86 : vector<8x48xf32>
    %88 = vector.extract_strided_slice %87 {offsets = [0, 0], sizes = [8, 16], strides = [1, 1]} : vector<8x48xf32> to vector<8x16xf32>
    %89 = vector.extract_strided_slice %87 {offsets = [0, 16], sizes = [8, 16], strides = [1, 1]} : vector<8x48xf32> to vector<8x16xf32>
    %90 = vector.extract_strided_slice %87 {offsets = [0, 32], sizes = [8, 16], strides = [1, 1]} : vector<8x48xf32> to vector<8x16xf32>
    %91 = vector.extract_strided_slice %81 {offsets = [0, 48], sizes = [8, 16], strides = [1, 1]} : vector<8x64xf32> to vector<8x16xf32>
    %92 = math.tanh %91 : vector<8x16xf32>
    %93 = arith.mulf %89, %53 : vector<8x16xf32>
    %94 = arith.mulf %88, %92 : vector<8x16xf32>
    %95 = arith.addf %93, %94 : vector<8x16xf32>
    %96 = math.tanh %95 : vector<8x16xf32>
    %97 = arith.mulf %90, %96 : vector<8x16xf32>
    %c2_i32 = arith.constant 2 : i32
    %c8_i32_28 = arith.constant 8 : i32
    %98 = arith.muli %c2_i32, %c8_i32_28 : i32
    %99 = tpu.assume_multiple %98, 8 : i32
    %100 = arith.index_cast %99 : i32 to index
    %c0_29 = arith.constant 0 : index
    %101 = vector.load %arg11[%100, %c0_29] : memref<64x128xf32, #tpu.memory_space<vmem>>, vector<8x128xf32>
    %cst_30 = arith.constant dense<0.000000e+00> : vector<8x128xf32>
    %102 = tpu.matmul %77, %0, %cst_30 {dimension_numbers = #tpu.dot_dimension_numbers<[1], [0], [0], [1], [0, 0, 1, 1], [], []>} : vector<8x32xf32>, vector<32x128xf32>, vector<8x128xf32> -> vector<8x128xf32>
    %103 = arith.addf %101, %102 : vector<8x128xf32>
    %104 = vector.extract_strided_slice %103 {offsets = [0, 0], sizes = [8, 96], strides = [1, 1]} : vector<8x128xf32> to vector<8x96xf32>
    %105 = arith.negf %104 : vector<8x96xf32>
    %106 = math.exp %105 : vector<8x96xf32>
    %cst_31 = arith.constant 1.000000e+00 : f32
    %107 = vector.broadcast %cst_31 : f32 to vector<8x96xf32>
    %108 = arith.addf %107, %106 : vector<8x96xf32>
    %109 = arith.divf %107, %108 : vector<8x96xf32>
    %110 = vector.extract_strided_slice %109 {offsets = [0, 0], sizes = [8, 32], strides = [1, 1]} : vector<8x96xf32> to vector<8x32xf32>
    %111 = vector.extract_strided_slice %109 {offsets = [0, 32], sizes = [8, 32], strides = [1, 1]} : vector<8x96xf32> to vector<8x32xf32>
    %112 = vector.extract_strided_slice %109 {offsets = [0, 64], sizes = [8, 32], strides = [1, 1]} : vector<8x96xf32> to vector<8x32xf32>
    %113 = vector.extract_strided_slice %103 {offsets = [0, 96], sizes = [8, 32], strides = [1, 1]} : vector<8x128xf32> to vector<8x32xf32>
    %114 = math.tanh %113 : vector<8x32xf32>
    %115 = arith.mulf %111, %75 : vector<8x32xf32>
    %116 = arith.mulf %110, %114 : vector<8x32xf32>
    %117 = arith.addf %115, %116 : vector<8x32xf32>
    %118 = math.tanh %117 : vector<8x32xf32>
    %119 = arith.mulf %112, %118 : vector<8x32xf32>
    %120 = tpu.concatenate %119, %97 in 1 : vector<8x32xf32>, vector<8x16xf32> -> vector<8x48xf32>
    %cst_32 = arith.constant dense<0.000000e+00> : vector<8x64xf32>
    %121 = tpu.matmul %120, %1, %cst_32 {dimension_numbers = #tpu.dot_dimension_numbers<[1], [0], [0], [1], [0, 0, 1, 1], [], []>} : vector<8x48xf32>, vector<48x64xf32>, vector<8x64xf32> -> vector<8x64xf32>
    %122 = vector.broadcast %2 : vector<1x64xf32> to vector<8x64xf32>
    %123 = arith.addf %121, %122 : vector<8x64xf32>
    %124 = vector.extract_strided_slice %123 {offsets = [0, 0], sizes = [8, 48], strides = [1, 1]} : vector<8x64xf32> to vector<8x48xf32>
    %125 = arith.negf %124 : vector<8x48xf32>
    %126 = math.exp %125 : vector<8x48xf32>
    %cst_33 = arith.constant 1.000000e+00 : f32
    %127 = vector.broadcast %cst_33 : f32 to vector<8x48xf32>
    %128 = arith.addf %127, %126 : vector<8x48xf32>
    %129 = arith.divf %127, %128 : vector<8x48xf32>
    %130 = vector.extract_strided_slice %129 {offsets = [0, 0], sizes = [8, 16], strides = [1, 1]} : vector<8x48xf32> to vector<8x16xf32>
    %131 = vector.extract_strided_slice %129 {offsets = [0, 16], sizes = [8, 16], strides = [1, 1]} : vector<8x48xf32> to vector<8x16xf32>
    %132 = vector.extract_strided_slice %129 {offsets = [0, 32], sizes = [8, 16], strides = [1, 1]} : vector<8x48xf32> to vector<8x16xf32>
    %133 = vector.extract_strided_slice %123 {offsets = [0, 48], sizes = [8, 16], strides = [1, 1]} : vector<8x64xf32> to vector<8x16xf32>
    %134 = math.tanh %133 : vector<8x16xf32>
    %135 = arith.mulf %131, %95 : vector<8x16xf32>
    %136 = arith.mulf %130, %134 : vector<8x16xf32>
    %137 = arith.addf %135, %136 : vector<8x16xf32>
    %138 = math.tanh %137 : vector<8x16xf32>
    %139 = arith.mulf %132, %138 : vector<8x16xf32>
    %c3_i32 = arith.constant 3 : i32
    %c8_i32_34 = arith.constant 8 : i32
    %140 = arith.muli %c3_i32, %c8_i32_34 : i32
    %141 = tpu.assume_multiple %140, 8 : i32
    %142 = arith.index_cast %141 : i32 to index
    %c0_35 = arith.constant 0 : index
    %143 = vector.load %arg11[%142, %c0_35] : memref<64x128xf32, #tpu.memory_space<vmem>>, vector<8x128xf32>
    %cst_36 = arith.constant dense<0.000000e+00> : vector<8x128xf32>
    %144 = tpu.matmul %119, %0, %cst_36 {dimension_numbers = #tpu.dot_dimension_numbers<[1], [0], [0], [1], [0, 0, 1, 1], [], []>} : vector<8x32xf32>, vector<32x128xf32>, vector<8x128xf32> -> vector<8x128xf32>
    %145 = arith.addf %143, %144 : vector<8x128xf32>
    %146 = vector.extract_strided_slice %145 {offsets = [0, 0], sizes = [8, 96], strides = [1, 1]} : vector<8x128xf32> to vector<8x96xf32>
    %147 = arith.negf %146 : vector<8x96xf32>
    %148 = math.exp %147 : vector<8x96xf32>
    %cst_37 = arith.constant 1.000000e+00 : f32
    %149 = vector.broadcast %cst_37 : f32 to vector<8x96xf32>
    %150 = arith.addf %149, %148 : vector<8x96xf32>
    %151 = arith.divf %149, %150 : vector<8x96xf32>
    %152 = vector.extract_strided_slice %151 {offsets = [0, 0], sizes = [8, 32], strides = [1, 1]} : vector<8x96xf32> to vector<8x32xf32>
    %153 = vector.extract_strided_slice %151 {offsets = [0, 32], sizes = [8, 32], strides = [1, 1]} : vector<8x96xf32> to vector<8x32xf32>
    %154 = vector.extract_strided_slice %151 {offsets = [0, 64], sizes = [8, 32], strides = [1, 1]} : vector<8x96xf32> to vector<8x32xf32>
    %155 = vector.extract_strided_slice %145 {offsets = [0, 96], sizes = [8, 32], strides = [1, 1]} : vector<8x128xf32> to vector<8x32xf32>
    %156 = math.tanh %155 : vector<8x32xf32>
    %157 = arith.mulf %153, %117 : vector<8x32xf32>
    %158 = arith.mulf %152, %156 : vector<8x32xf32>
    %159 = arith.addf %157, %158 : vector<8x32xf32>
    %160 = math.tanh %159 : vector<8x32xf32>
    %161 = arith.mulf %154, %160 : vector<8x32xf32>
    %162 = tpu.concatenate %161, %139 in 1 : vector<8x32xf32>, vector<8x16xf32> -> vector<8x48xf32>
    %cst_38 = arith.constant dense<0.000000e+00> : vector<8x64xf32>
    %163 = tpu.matmul %162, %1, %cst_38 {dimension_numbers = #tpu.dot_dimension_numbers<[1], [0], [0], [1], [0, 0, 1, 1], [], []>} : vector<8x48xf32>, vector<48x64xf32>, vector<8x64xf32> -> vector<8x64xf32>
    %164 = vector.broadcast %2 : vector<1x64xf32> to vector<8x64xf32>
    %165 = arith.addf %163, %164 : vector<8x64xf32>
    %166 = vector.extract_strided_slice %165 {offsets = [0, 0], sizes = [8, 48], strides = [1, 1]} : vector<8x64xf32> to vector<8x48xf32>
    %167 = arith.negf %166 : vector<8x48xf32>
    %168 = math.exp %167 : vector<8x48xf32>
    %cst_39 = arith.constant 1.000000e+00 : f32
    %169 = vector.broadcast %cst_39 : f32 to vector<8x48xf32>
    %170 = arith.addf %169, %168 : vector<8x48xf32>
    %171 = arith.divf %169, %170 : vector<8x48xf32>
    %172 = vector.extract_strided_slice %171 {offsets = [0, 0], sizes = [8, 16], strides = [1, 1]} : vector<8x48xf32> to vector<8x16xf32>
    %173 = vector.extract_strided_slice %171 {offsets = [0, 16], sizes = [8, 16], strides = [1, 1]} : vector<8x48xf32> to vector<8x16xf32>
    %174 = vector.extract_strided_slice %171 {offsets = [0, 32], sizes = [8, 16], strides = [1, 1]} : vector<8x48xf32> to vector<8x16xf32>
    %175 = vector.extract_strided_slice %165 {offsets = [0, 48], sizes = [8, 16], strides = [1, 1]} : vector<8x64xf32> to vector<8x16xf32>
    %176 = math.tanh %175 : vector<8x16xf32>
    %177 = arith.mulf %173, %137 : vector<8x16xf32>
    %178 = arith.mulf %172, %176 : vector<8x16xf32>
    %179 = arith.addf %177, %178 : vector<8x16xf32>
    %180 = math.tanh %179 : vector<8x16xf32>
    %181 = arith.mulf %174, %180 : vector<8x16xf32>
    %c4_i32 = arith.constant 4 : i32
    %c8_i32_40 = arith.constant 8 : i32
    %182 = arith.muli %c4_i32, %c8_i32_40 : i32
    %183 = tpu.assume_multiple %182, 8 : i32
    %184 = arith.index_cast %183 : i32 to index
    %c0_41 = arith.constant 0 : index
    %185 = vector.load %arg11[%184, %c0_41] : memref<64x128xf32, #tpu.memory_space<vmem>>, vector<8x128xf32>
    %cst_42 = arith.constant dense<0.000000e+00> : vector<8x128xf32>
    %186 = tpu.matmul %161, %0, %cst_42 {dimension_numbers = #tpu.dot_dimension_numbers<[1], [0], [0], [1], [0, 0, 1, 1], [], []>} : vector<8x32xf32>, vector<32x128xf32>, vector<8x128xf32> -> vector<8x128xf32>
    %187 = arith.addf %185, %186 : vector<8x128xf32>
    %188 = vector.extract_strided_slice %187 {offsets = [0, 0], sizes = [8, 96], strides = [1, 1]} : vector<8x128xf32> to vector<8x96xf32>
    %189 = arith.negf %188 : vector<8x96xf32>
    %190 = math.exp %189 : vector<8x96xf32>
    %cst_43 = arith.constant 1.000000e+00 : f32
    %191 = vector.broadcast %cst_43 : f32 to vector<8x96xf32>
    %192 = arith.addf %191, %190 : vector<8x96xf32>
    %193 = arith.divf %191, %192 : vector<8x96xf32>
    %194 = vector.extract_strided_slice %193 {offsets = [0, 0], sizes = [8, 32], strides = [1, 1]} : vector<8x96xf32> to vector<8x32xf32>
    %195 = vector.extract_strided_slice %193 {offsets = [0, 32], sizes = [8, 32], strides = [1, 1]} : vector<8x96xf32> to vector<8x32xf32>
    %196 = vector.extract_strided_slice %193 {offsets = [0, 64], sizes = [8, 32], strides = [1, 1]} : vector<8x96xf32> to vector<8x32xf32>
    %197 = vector.extract_strided_slice %187 {offsets = [0, 96], sizes = [8, 32], strides = [1, 1]} : vector<8x128xf32> to vector<8x32xf32>
    %198 = math.tanh %197 : vector<8x32xf32>
    %199 = arith.mulf %195, %159 : vector<8x32xf32>
    %200 = arith.mulf %194, %198 : vector<8x32xf32>
    %201 = arith.addf %199, %200 : vector<8x32xf32>
    %202 = math.tanh %201 : vector<8x32xf32>
    %203 = arith.mulf %196, %202 : vector<8x32xf32>
    %204 = tpu.concatenate %203, %181 in 1 : vector<8x32xf32>, vector<8x16xf32> -> vector<8x48xf32>
    %cst_44 = arith.constant dense<0.000000e+00> : vector<8x64xf32>
    %205 = tpu.matmul %204, %1, %cst_44 {dimension_numbers = #tpu.dot_dimension_numbers<[1], [0], [0], [1], [0, 0, 1, 1], [], []>} : vector<8x48xf32>, vector<48x64xf32>, vector<8x64xf32> -> vector<8x64xf32>
    %206 = vector.broadcast %2 : vector<1x64xf32> to vector<8x64xf32>
    %207 = arith.addf %205, %206 : vector<8x64xf32>
    %208 = vector.extract_strided_slice %207 {offsets = [0, 0], sizes = [8, 48], strides = [1, 1]} : vector<8x64xf32> to vector<8x48xf32>
    %209 = arith.negf %208 : vector<8x48xf32>
    %210 = math.exp %209 : vector<8x48xf32>
    %cst_45 = arith.constant 1.000000e+00 : f32
    %211 = vector.broadcast %cst_45 : f32 to vector<8x48xf32>
    %212 = arith.addf %211, %210 : vector<8x48xf32>
    %213 = arith.divf %211, %212 : vector<8x48xf32>
    %214 = vector.extract_strided_slice %213 {offsets = [0, 0], sizes = [8, 16], strides = [1, 1]} : vector<8x48xf32> to vector<8x16xf32>
    %215 = vector.extract_strided_slice %213 {offsets = [0, 16], sizes = [8, 16], strides = [1, 1]} : vector<8x48xf32> to vector<8x16xf32>
    %216 = vector.extract_strided_slice %213 {offsets = [0, 32], sizes = [8, 16], strides = [1, 1]} : vector<8x48xf32> to vector<8x16xf32>
    %217 = vector.extract_strided_slice %207 {offsets = [0, 48], sizes = [8, 16], strides = [1, 1]} : vector<8x64xf32> to vector<8x16xf32>
    %218 = math.tanh %217 : vector<8x16xf32>
    %219 = arith.mulf %215, %179 : vector<8x16xf32>
    %220 = arith.mulf %214, %218 : vector<8x16xf32>
    %221 = arith.addf %219, %220 : vector<8x16xf32>
    %222 = math.tanh %221 : vector<8x16xf32>
    %223 = arith.mulf %216, %222 : vector<8x16xf32>
    %c5_i32 = arith.constant 5 : i32
    %c8_i32_46 = arith.constant 8 : i32
    %224 = arith.muli %c5_i32, %c8_i32_46 : i32
    %225 = tpu.assume_multiple %224, 8 : i32
    %226 = arith.index_cast %225 : i32 to index
    %c0_47 = arith.constant 0 : index
    %227 = vector.load %arg11[%226, %c0_47] : memref<64x128xf32, #tpu.memory_space<vmem>>, vector<8x128xf32>
    %cst_48 = arith.constant dense<0.000000e+00> : vector<8x128xf32>
    %228 = tpu.matmul %203, %0, %cst_48 {dimension_numbers = #tpu.dot_dimension_numbers<[1], [0], [0], [1], [0, 0, 1, 1], [], []>} : vector<8x32xf32>, vector<32x128xf32>, vector<8x128xf32> -> vector<8x128xf32>
    %229 = arith.addf %227, %228 : vector<8x128xf32>
    %230 = vector.extract_strided_slice %229 {offsets = [0, 0], sizes = [8, 96], strides = [1, 1]} : vector<8x128xf32> to vector<8x96xf32>
    %231 = arith.negf %230 : vector<8x96xf32>
    %232 = math.exp %231 : vector<8x96xf32>
    %cst_49 = arith.constant 1.000000e+00 : f32
    %233 = vector.broadcast %cst_49 : f32 to vector<8x96xf32>
    %234 = arith.addf %233, %232 : vector<8x96xf32>
    %235 = arith.divf %233, %234 : vector<8x96xf32>
    %236 = vector.extract_strided_slice %235 {offsets = [0, 0], sizes = [8, 32], strides = [1, 1]} : vector<8x96xf32> to vector<8x32xf32>
    %237 = vector.extract_strided_slice %235 {offsets = [0, 32], sizes = [8, 32], strides = [1, 1]} : vector<8x96xf32> to vector<8x32xf32>
    %238 = vector.extract_strided_slice %235 {offsets = [0, 64], sizes = [8, 32], strides = [1, 1]} : vector<8x96xf32> to vector<8x32xf32>
    %239 = vector.extract_strided_slice %229 {offsets = [0, 96], sizes = [8, 32], strides = [1, 1]} : vector<8x128xf32> to vector<8x32xf32>
    %240 = math.tanh %239 : vector<8x32xf32>
    %241 = arith.mulf %237, %201 : vector<8x32xf32>
    %242 = arith.mulf %236, %240 : vector<8x32xf32>
    %243 = arith.addf %241, %242 : vector<8x32xf32>
    %244 = math.tanh %243 : vector<8x32xf32>
    %245 = arith.mulf %238, %244 : vector<8x32xf32>
    %246 = tpu.concatenate %245, %223 in 1 : vector<8x32xf32>, vector<8x16xf32> -> vector<8x48xf32>
    %cst_50 = arith.constant dense<0.000000e+00> : vector<8x64xf32>
    %247 = tpu.matmul %246, %1, %cst_50 {dimension_numbers = #tpu.dot_dimension_numbers<[1], [0], [0], [1], [0, 0, 1, 1], [], []>} : vector<8x48xf32>, vector<48x64xf32>, vector<8x64xf32> -> vector<8x64xf32>
    %248 = vector.broadcast %2 : vector<1x64xf32> to vector<8x64xf32>
    %249 = arith.addf %247, %248 : vector<8x64xf32>
    %250 = vector.extract_strided_slice %249 {offsets = [0, 0], sizes = [8, 48], strides = [1, 1]} : vector<8x64xf32> to vector<8x48xf32>
    %251 = arith.negf %250 : vector<8x48xf32>
    %252 = math.exp %251 : vector<8x48xf32>
    %cst_51 = arith.constant 1.000000e+00 : f32
    %253 = vector.broadcast %cst_51 : f32 to vector<8x48xf32>
    %254 = arith.addf %253, %252 : vector<8x48xf32>
    %255 = arith.divf %253, %254 : vector<8x48xf32>
    %256 = vector.extract_strided_slice %255 {offsets = [0, 0], sizes = [8, 16], strides = [1, 1]} : vector<8x48xf32> to vector<8x16xf32>
    %257 = vector.extract_strided_slice %255 {offsets = [0, 16], sizes = [8, 16], strides = [1, 1]} : vector<8x48xf32> to vector<8x16xf32>
    %258 = vector.extract_strided_slice %255 {offsets = [0, 32], sizes = [8, 16], strides = [1, 1]} : vector<8x48xf32> to vector<8x16xf32>
    %259 = vector.extract_strided_slice %249 {offsets = [0, 48], sizes = [8, 16], strides = [1, 1]} : vector<8x64xf32> to vector<8x16xf32>
    %260 = math.tanh %259 : vector<8x16xf32>
    %261 = arith.mulf %257, %221 : vector<8x16xf32>
    %262 = arith.mulf %256, %260 : vector<8x16xf32>
    %263 = arith.addf %261, %262 : vector<8x16xf32>
    %264 = math.tanh %263 : vector<8x16xf32>
    %265 = arith.mulf %258, %264 : vector<8x16xf32>
    %c6_i32 = arith.constant 6 : i32
    %c8_i32_52 = arith.constant 8 : i32
    %266 = arith.muli %c6_i32, %c8_i32_52 : i32
    %267 = tpu.assume_multiple %266, 8 : i32
    %268 = arith.index_cast %267 : i32 to index
    %c0_53 = arith.constant 0 : index
    %269 = vector.load %arg11[%268, %c0_53] : memref<64x128xf32, #tpu.memory_space<vmem>>, vector<8x128xf32>
    %cst_54 = arith.constant dense<0.000000e+00> : vector<8x128xf32>
    %270 = tpu.matmul %245, %0, %cst_54 {dimension_numbers = #tpu.dot_dimension_numbers<[1], [0], [0], [1], [0, 0, 1, 1], [], []>} : vector<8x32xf32>, vector<32x128xf32>, vector<8x128xf32> -> vector<8x128xf32>
    %271 = arith.addf %269, %270 : vector<8x128xf32>
    %272 = vector.extract_strided_slice %271 {offsets = [0, 0], sizes = [8, 96], strides = [1, 1]} : vector<8x128xf32> to vector<8x96xf32>
    %273 = arith.negf %272 : vector<8x96xf32>
    %274 = math.exp %273 : vector<8x96xf32>
    %cst_55 = arith.constant 1.000000e+00 : f32
    %275 = vector.broadcast %cst_55 : f32 to vector<8x96xf32>
    %276 = arith.addf %275, %274 : vector<8x96xf32>
    %277 = arith.divf %275, %276 : vector<8x96xf32>
    %278 = vector.extract_strided_slice %277 {offsets = [0, 0], sizes = [8, 32], strides = [1, 1]} : vector<8x96xf32> to vector<8x32xf32>
    %279 = vector.extract_strided_slice %277 {offsets = [0, 32], sizes = [8, 32], strides = [1, 1]} : vector<8x96xf32> to vector<8x32xf32>
    %280 = vector.extract_strided_slice %277 {offsets = [0, 64], sizes = [8, 32], strides = [1, 1]} : vector<8x96xf32> to vector<8x32xf32>
    %281 = vector.extract_strided_slice %271 {offsets = [0, 96], sizes = [8, 32], strides = [1, 1]} : vector<8x128xf32> to vector<8x32xf32>
    %282 = math.tanh %281 : vector<8x32xf32>
    %283 = arith.mulf %279, %243 : vector<8x32xf32>
    %284 = arith.mulf %278, %282 : vector<8x32xf32>
    %285 = arith.addf %283, %284 : vector<8x32xf32>
    %286 = math.tanh %285 : vector<8x32xf32>
    %287 = arith.mulf %280, %286 : vector<8x32xf32>
    %288 = tpu.concatenate %287, %265 in 1 : vector<8x32xf32>, vector<8x16xf32> -> vector<8x48xf32>
    %cst_56 = arith.constant dense<0.000000e+00> : vector<8x64xf32>
    %289 = tpu.matmul %288, %1, %cst_56 {dimension_numbers = #tpu.dot_dimension_numbers<[1], [0], [0], [1], [0, 0, 1, 1], [], []>} : vector<8x48xf32>, vector<48x64xf32>, vector<8x64xf32> -> vector<8x64xf32>
    %290 = vector.broadcast %2 : vector<1x64xf32> to vector<8x64xf32>
    %291 = arith.addf %289, %290 : vector<8x64xf32>
    %292 = vector.extract_strided_slice %291 {offsets = [0, 0], sizes = [8, 48], strides = [1, 1]} : vector<8x64xf32> to vector<8x48xf32>
    %293 = arith.negf %292 : vector<8x48xf32>
    %294 = math.exp %293 : vector<8x48xf32>
    %cst_57 = arith.constant 1.000000e+00 : f32
    %295 = vector.broadcast %cst_57 : f32 to vector<8x48xf32>
    %296 = arith.addf %295, %294 : vector<8x48xf32>
    %297 = arith.divf %295, %296 : vector<8x48xf32>
    %298 = vector.extract_strided_slice %297 {offsets = [0, 0], sizes = [8, 16], strides = [1, 1]} : vector<8x48xf32> to vector<8x16xf32>
    %299 = vector.extract_strided_slice %297 {offsets = [0, 16], sizes = [8, 16], strides = [1, 1]} : vector<8x48xf32> to vector<8x16xf32>
    %300 = vector.extract_strided_slice %297 {offsets = [0, 32], sizes = [8, 16], strides = [1, 1]} : vector<8x48xf32> to vector<8x16xf32>
    %301 = vector.extract_strided_slice %291 {offsets = [0, 48], sizes = [8, 16], strides = [1, 1]} : vector<8x64xf32> to vector<8x16xf32>
    %302 = math.tanh %301 : vector<8x16xf32>
    %303 = arith.mulf %299, %263 : vector<8x16xf32>
    %304 = arith.mulf %298, %302 : vector<8x16xf32>
    %305 = arith.addf %303, %304 : vector<8x16xf32>
    %306 = math.tanh %305 : vector<8x16xf32>
    %307 = arith.mulf %300, %306 : vector<8x16xf32>
    %c7_i32 = arith.constant 7 : i32
    %c8_i32_58 = arith.constant 8 : i32
    %308 = arith.muli %c7_i32, %c8_i32_58 : i32
    %309 = tpu.assume_multiple %308, 8 : i32
    %310 = arith.index_cast %309 : i32 to index
    %c0_59 = arith.constant 0 : index
    %311 = vector.load %arg11[%310, %c0_59] : memref<64x128xf32, #tpu.memory_space<vmem>>, vector<8x128xf32>
    %cst_60 = arith.constant dense<0.000000e+00> : vector<8x128xf32>
    %312 = tpu.matmul %287, %0, %cst_60 {dimension_numbers = #tpu.dot_dimension_numbers<[1], [0], [0], [1], [0, 0, 1, 1], [], []>} : vector<8x32xf32>, vector<32x128xf32>, vector<8x128xf32> -> vector<8x128xf32>
    %313 = arith.addf %311, %312 : vector<8x128xf32>
    %314 = vector.extract_strided_slice %313 {offsets = [0, 0], sizes = [8, 96], strides = [1, 1]} : vector<8x128xf32> to vector<8x96xf32>
    %315 = arith.negf %314 : vector<8x96xf32>
    %316 = math.exp %315 : vector<8x96xf32>
    %cst_61 = arith.constant 1.000000e+00 : f32
    %317 = vector.broadcast %cst_61 : f32 to vector<8x96xf32>
    %318 = arith.addf %317, %316 : vector<8x96xf32>
    %319 = arith.divf %317, %318 : vector<8x96xf32>
    %320 = vector.extract_strided_slice %319 {offsets = [0, 0], sizes = [8, 32], strides = [1, 1]} : vector<8x96xf32> to vector<8x32xf32>
    %321 = vector.extract_strided_slice %319 {offsets = [0, 32], sizes = [8, 32], strides = [1, 1]} : vector<8x96xf32> to vector<8x32xf32>
    %322 = vector.extract_strided_slice %319 {offsets = [0, 64], sizes = [8, 32], strides = [1, 1]} : vector<8x96xf32> to vector<8x32xf32>
    %323 = vector.extract_strided_slice %313 {offsets = [0, 96], sizes = [8, 32], strides = [1, 1]} : vector<8x128xf32> to vector<8x32xf32>
    %324 = math.tanh %323 : vector<8x32xf32>
    %325 = arith.mulf %321, %285 : vector<8x32xf32>
    %326 = arith.mulf %320, %324 : vector<8x32xf32>
    %327 = arith.addf %325, %326 : vector<8x32xf32>
    %328 = math.tanh %327 : vector<8x32xf32>
    %329 = arith.mulf %322, %328 : vector<8x32xf32>
    %330 = tpu.concatenate %329, %307 in 1 : vector<8x32xf32>, vector<8x16xf32> -> vector<8x48xf32>
    %cst_62 = arith.constant dense<0.000000e+00> : vector<8x64xf32>
    %331 = tpu.matmul %330, %1, %cst_62 {dimension_numbers = #tpu.dot_dimension_numbers<[1], [0], [0], [1], [0, 0, 1, 1], [], []>} : vector<8x48xf32>, vector<48x64xf32>, vector<8x64xf32> -> vector<8x64xf32>
    %332 = vector.broadcast %2 : vector<1x64xf32> to vector<8x64xf32>
    %333 = arith.addf %331, %332 : vector<8x64xf32>
    %334 = vector.extract_strided_slice %333 {offsets = [0, 0], sizes = [8, 48], strides = [1, 1]} : vector<8x64xf32> to vector<8x48xf32>
    %335 = arith.negf %334 : vector<8x48xf32>
    %336 = math.exp %335 : vector<8x48xf32>
    %cst_63 = arith.constant 1.000000e+00 : f32
    %337 = vector.broadcast %cst_63 : f32 to vector<8x48xf32>
    %338 = arith.addf %337, %336 : vector<8x48xf32>
    %339 = arith.divf %337, %338 : vector<8x48xf32>
    %340 = vector.extract_strided_slice %339 {offsets = [0, 0], sizes = [8, 16], strides = [1, 1]} : vector<8x48xf32> to vector<8x16xf32>
    %341 = vector.extract_strided_slice %339 {offsets = [0, 16], sizes = [8, 16], strides = [1, 1]} : vector<8x48xf32> to vector<8x16xf32>
    %342 = vector.extract_strided_slice %339 {offsets = [0, 32], sizes = [8, 16], strides = [1, 1]} : vector<8x48xf32> to vector<8x16xf32>
    %343 = vector.extract_strided_slice %333 {offsets = [0, 48], sizes = [8, 16], strides = [1, 1]} : vector<8x64xf32> to vector<8x16xf32>
    %344 = math.tanh %343 : vector<8x16xf32>
    %345 = arith.mulf %341, %305 : vector<8x16xf32>
    %346 = arith.mulf %340, %344 : vector<8x16xf32>
    %347 = arith.addf %345, %346 : vector<8x16xf32>
    %348 = math.tanh %347 : vector<8x16xf32>
    %349 = arith.mulf %342, %348 : vector<8x16xf32>
    %c8_i32_64 = arith.constant 8 : i32
    %c0_65 = arith.constant 0 : index
    %c0_66 = arith.constant 0 : index
    %350 = vector.load %arg6[%c0_65, %c0_66] : memref<16x8xf32, #tpu.memory_space<vmem>>, vector<16x8xf32>
    %cst_67 = arith.constant dense<0.000000e+00> : vector<8x8xf32>
    %351 = tpu.matmul %349, %350, %cst_67 {dimension_numbers = #tpu.dot_dimension_numbers<[1], [0], [0], [1], [0, 0, 1, 1], [], []>} : vector<8x16xf32>, vector<16x8xf32>, vector<8x8xf32> -> vector<8x8xf32>
    %c0_68 = arith.constant 0 : index
    %c0_69 = arith.constant 0 : index
    %352 = vector.load %arg7[%c0_68, %c0_69] : memref<1x8xf32, #tpu.memory_space<vmem>>, vector<1x8xf32>
    %353 = vector.broadcast %352 : vector<1x8xf32> to vector<8x8xf32>
    %354 = arith.addf %351, %353 : vector<8x8xf32>
    %c0_70 = arith.constant 0 : index
    %c0_71 = arith.constant 0 : index
    %355 = vector.load %arg8[%c0_70, %c0_71] : memref<8x5xf32, #tpu.memory_space<vmem>>, vector<8x5xf32>
    %cst_72 = arith.constant dense<0.000000e+00> : vector<8x5xf32>
    %356 = tpu.matmul %354, %355, %cst_72 {dimension_numbers = #tpu.dot_dimension_numbers<[1], [0], [0], [1], [0, 0, 1, 1], [], []>} : vector<8x8xf32>, vector<8x5xf32>, vector<8x5xf32> -> vector<8x5xf32>
    %c0_73 = arith.constant 0 : index
    %c0_74 = arith.constant 0 : index
    %357 = vector.load %arg9[%c0_73, %c0_74] : memref<1x5xf32, #tpu.memory_space<vmem>>, vector<1x5xf32>
    %358 = vector.broadcast %357 : vector<1x5xf32> to vector<8x5xf32>
    %359 = arith.addf %356, %358 : vector<8x5xf32>
    %c0_75 = arith.constant 0 : index
    %c0_76 = arith.constant 0 : index
    %360 = vector.load %arg10[%c0_75, %c0_76] : memref<8x5xf32, #tpu.memory_space<vmem>>, vector<8x5xf32>
    tpu.vector_store %arg10[%c0_75, %c0_76], %359 {strides = array<i32>} : memref<8x5xf32, #tpu.memory_space<vmem>>, vector<8x5xf32>,
    return
  }
}

</mosaic_0001>

<bundles_post_ra>
// kernel: tpu_custom_call.1
= control target key start
LH: loop header
LB: loop body
LE: loop exit
PB: predicated region body
PF: predicated region fallthrough
CT: control target
= control target key end

     0   :  { %v2551_v3 = vmov 0.0   ;;  %vm64_vm0 = vcmask 130048   ;;  %s3093_s0 = inlined_call_operand.vmem [shape: f32[64,16], index: 0, kind: input, shape index: {}]   ;;  %s3094_s1 = inlined_call_operand.vmem [shape: f32[16,128], index: 1, kind: input, shape index: {}]   ;;  %s3095_s2 = inlined_call_operand.vmem [shape: f32[32,128], index: 2, kind: input, shape index: {}]   ;;  %s3096_s3 = inlined_call_operand.vmem [shape: f32[1,128], index: 3, kind: input, shape index: {}]   ;;  %s3097_s4 = inlined_call_operand.vmem [shape: f32[48,64], index: 4, kind: input, shape index: {}]   ;;  %s3098_s5 = inlined_call_operand.vmem [shape: f32[1,64], index: 5, kind: input, shape index: {}]   ;;  %s3099_s6 = inlined_call_operand.vmem [shape: f32[16,8], index: 6, kind: input, shape index: {}]   ;;  %s3100_s7 = inlined_call_operand.vmem [shape: f32[1,8], index: 7, kind: input, shape index: {}]   ;;  %s3101_s8 = inlined_call_operand.vmem [shape: f32[8,5], index: 8, kind: input, shape index: {}]   ;;  %s3102_s9 = inlined_call_operand.vmem [shape: f32[1,5], index: 9, kind: input, shape index: {}]   ;;  %s3103_s10 = inlined_call_operand.hbm [shape: f32[8,5], index: 10, kind: output, shape index: {}]  }
   0x1   :  { %v56_v0 = vld [vmem:[%s3094_s1 + $0x8] sm:$0xff]  ;;  %v2620_v1 = vld [vmem:[%s3095_s2 + $0x18] sm:$0xff]  ;;  %v55_v2 = vld [vmem:[%s3094_s1] sm:$0xff]  ;;  %2172 = vmatprep.subr.mxu1 %v2551_v3 }
   0x2   :  { %2156 = vmatprep.subr.mxu0 %v56_v0  ;;  %v47_v4 = vld [vmem:[%s3093_s0] sm:$0xff]  ;;  %2173 = vmatpush3.msra.mxu1 %v2620_v1  ;;  %v2633_v5 = vld [vmem:[%s3095_s2 + $0x10] sm:$0xff]  ;;  %v48_v6 = vld [vmem:[%s3093_s0 + $0x8] sm:$0xff] }
   0x3   :  { %2157 = vmatpush3.msra.mxu0 %v56_v0 }
   0x4   :  { %15 = vsyncpa [#allocation4], 0  ;;  %2158 = vmatprep.subr.mxu0 %v55_v2  ;;  %2174 = vmatprep.subr.mxu1 %v2551_v3  ;;  %v2643_v7 = vld [vmem:[%s3095_s2 + $0x8] sm:$0xff]  ;;  %v2651_v8 = vld [vmem:[%s3095_s2] sm:$0xff]  ;;  %vm2552_vm1 = vmmov 0   ;;  %s2553_s29 = smov 32  }
   0x5   :  { %2159 = vmatpush3.msra.mxu0 %v55_v2  ;;  %2160 = vmatprep.mubr.msk.f32.mxu0 %vm64_vm0, %v47_v4  ;;  %v2676_v10 = vld [vmem:[%s3096_s3] ss:$0 sm:$0xff]  ;;  %v49_v26 = vld [vmem:[%s3093_s0 + $0x10] sm:$0xff]  ;;  %v50_v27 = vld [vmem:[%s3093_s0 + $0x18] sm:$0xff]  ;;  %vm203_vm2 = vcmask 261120   ;;  %vm313_vm3 = vcmask 392192  }
   0x6   :  { %2175 = vmatpush3.msra.mxu1 %v2633_v5  ;;  %2161 = vmatmul.mubr.msk.f32.vlgmr.msra.gmra.mxu0 %vm64_vm0, %v48_v6  ;;  %v2693_v28 = vld [vmem:[%s3097_s4 + $0x28] sm:$0xff]  ;;  %v51_v29 = vld [vmem:[%s3093_s0 + $0x20] sm:$0xff]  ;;  %v2710_v31 = vld [vmem:[%s3097_s4 + $0x18] sm:$0xff]  ;;  %s2555_s14 = smov 80   ;;  %s2557_s19 = smov 96   ;;  %vm1910_vm4 = vcmask 64512  }
   0x7   :  { %2176 = vmatprep.subr.mxu1 %v2551_v3  ;;  %2180 = vmatprep.mubr.msk.f32.mxu1 %vm2552_vm1, %v2551_v3  ;;  %v2703_v30 = vld [vmem:[%s3097_s4 + $0x20] sm:$0xff]  ;;  %v52_v32 = vld [vmem:[%s3093_s0 + $0x28] sm:$0xff]  ;;  %v53_v33 = vld [vmem:[%s3093_s0 + $0x30] sm:$0xff]  ;;  %vm1984_vm5 = vcmask 39936  }
   0x8   :  { %2177 = vmatpush3.msra.mxu1 %v2643_v7  ;;  %2183 = vmatprep.subr.mxu0 %v2551_v3  ;;  %v2724_v34 = vld [vmem:[%s3097_s4 + $0x10] sm:$0xff]  ;;  %v2732_v35 = vld [vmem:[%s3097_s4 + $0x8] sm:$0xff]  ;;  %v54_v36 = vld [vmem:[%s3093_s0 + $0x38] sm:$0xff]  ;;  %s2554_s0 = smov 64  }
   0x9   :  { %2178 = vmatprep.subr.mxu1 %v2551_v3  ;;  %2163 = vmatprep.mubr.msk.f32.mxu0 %vm64_vm0, %v49_v26  ;;  %v2749_v38 = vld [vmem:[%s3097_s4] sm:$0xff] }
   0xa   :  { %2179 = vmatpush3.msra.mxu1 %v2651_v8  ;;  %2184 = vmatpush3.msra.mxu0 %v2693_v28  ;;  %v2801_v63 = vld [vmem:[%s3098_s5] ss:$0 sm:$0xff]  ;;  %s2556_s5 = smov 16  }
   0xb   :  { %2181 = vmatmul.mubr.f32.vlgmr.msra.gmra.mxu1 %v2551_v3  ;;  %2198 = vmatprep.subr.mxu1 %v2551_v3 }
   0xc   :  { %2199 = vmatpush3.msra.mxu1 %v2620_v1  ;;  %2206 = vmatprep.mubr.msk.f32.mxu1 %vm2552_vm1, %v2551_v3 }
   0xd   :  { %2200 = vmatprep.subr.mxu1 %v2551_v3  ;;  %2164 = vmatmul.mubr.msk.f32.gmra.mxu0 %vm64_vm0, %v50_v27 }
   0xe   :  { %2201 = vmatpush3.msra.mxu1 %v2633_v5  ;;  %2185 = vmatprep.subr.mxu0 %v2551_v3 }
   0xf   :  { %2202 = vmatprep.subr.mxu1 %v2551_v3  ;;  %2166 = vmatprep.mubr.msk.f32.mxu0 %vm64_vm0, %v51_v29 }
  0x10   :  { %2203 = vmatpush3.msra.mxu1 %v2643_v7  ;;  %2186 = vmatpush3.msra.mxu0 %v2703_v30 }
  0x11   :  { %2204 = vmatprep.subr.mxu1 %v2551_v3  ;;  %2187 = vmatprep.subr.mxu0 %v2551_v3 }
  0x12   :  { %2205 = vmatpush3.msra.mxu1 %v2651_v8  ;;  %2188 = vmatpush3.msra.mxu0 %v2710_v31 }
  0x13   :  { %2209 = vmatprep.subr.mxu1 %v2551_v3  ;;  %2167 = vmatmul.mubr.msk.f32.gmra.mxu0 %vm64_vm0, %v52_v32 }
  0x14   :  { %2189 = vmatprep.subr.mxu0 %v2551_v3  ;;  %2169 = vmatprep.mubr.msk.f32.mxu0 %vm64_vm0, %v53_v33 }
  0x15   :  { %2190 = vmatpush3.msra.mxu0 %v2724_v34 }
  0x16   :  { %2191 = vmatprep.subr.mxu0 %v2551_v3 }
  0x17   :  { %2192 = vmatpush3.msra.mxu0 %v2732_v35 }
  0x18   :  { %2170 = vmatmul.mubr.msk.f32.gmra.mxu0 %vm64_vm0, %v54_v36  ;;  %2193 = vmatprep.subr.mxu0 %v2551_v3 }
  0x19   :  { %2195 = vmatprep.mubr.msk.f32.mxu0 %vm2552_vm1, %v2551_v3  ;;  %2194 = vmatpush3.msra.mxu0 %v2749_v38 }
  0x1a   :  { %2224 = vmatprep.subr.mxu0 %v2551_v3 }
  0xc6   :  { %v2671_v9 = vpop.f32.mrf.mxu0 }
  0xc7   :  { %v161_v49 = vadd.f32 %v2671_v9, %v2676_v10 }
  0xc8   :  { %v155_v11 = vpop.f32.mrf.mxu0 }
  0xc9   :  { %v156_v12 = vadd.f32 %v2676_v10, %v155_v11 }
  0xcb   :  { %v273_v13 = vpop.f32.mrf.mxu1 }
  0xcc   :  { %v277_v14 = vadd.f32 %v273_v13, %v156_v12 }
  0xcd   :  { %v2182_v15 = vpop.f32.mrf.mxu1  ;;  %v2781_v43 = vpop.f32.mrf.mxu0 }
  0xce   :  { %2400 = vtanh.f32 %v277_v14  ;;  %v2009_v17 = vmul.f32 -1.442695, %v277_v14 }
  0xcf   :  { %v2783_v44 = vpop.f32.mrf.mxu0 }
  0xd0   :  { %2402 = vpow2.f32 %v2009_v17 }
  0xd3   :  { %v2785_v45 = vpop.f32.mrf.mxu0 }
  0xd5   :  { %v2787_v46 = vpop.f32.mrf.mxu0 }
  0xd8   :  { %v2789_v47 = vpop.f32.mrf.mxu0 }
  0xda   :  { %v2791_v48 = vpop.f32.mrf.mxu0 }
  0xdb   :  { %v2401_v16 = vpop.eup %2400 }
  0xdc   :  { %287 = vrot.lane.b32.xlu0 %v2401_v16, %s2553_s29 }
  0xdd   :  { %v2403_v18 = vpop.eup %2402 }
  0xde   :  { %v281_v19 = vadd.f32 1.0, %v2403_v18 }
  0xe0   :  { %2404 = vrcp.f32 %v281_v19 }
  0xed   :  { %v2405_v20 = vpop.eup %2404 }
  0xee   :  { %v285_v23 = vmul.f32 0.0, %v2405_v20 }
 0x14e   :  { %v288_v21 = vpop.permute.xlu0 %287 }
 0x14f   :  { %v290_v22 = vmul.f32 %v2405_v20, %v288_v21 }
 0x151   :  { %292 = vrot.lane.b32.xlu0 %v290_v22, %s2553_s29 }
 0x1c3   :  { %v293_v24 = vpop.permute.xlu0 %292 }
 0x1c4   :  { %v2681_v25 = vadd.f32 %v293_v24, %v285_v23 }
 0x1c6   :  { %2406 = vtanh.f32 %v2681_v25 }
 0x1d3   :  { %v2407_v37 = vpop.eup %2406 }
 0x1d4   :  { %298 = vrot.lane.b32.xlu1 %v2407_v37, %s2553_s29 }
 0x246   :  { %v299_v39 = vpop.permute.xlu1 %298 }
 0x247   :  { %v301_v40 = vmul.f32 %v2405_v20, %v299_v39  ;;  %v166_v20 = vadd.f32 %v2676_v10, %v2783_v44 }
 0x249   :  { %303 = vrot.lane.b32.xlu1 %v301_v40, %s2554_s0 }
 0x2bb   :  { %v304_v41 = vpop.permute.xlu1 %303 }
 0x2bc   :  { %v306_v42 = vsel %vm203_vm2, %v304_v41, 0.0  ;;  %2207 = vmatmul.mubr.msk.f32.vlgmr.msra.gmra.mxu1 %vm203_vm2, %v304_v41 }
 0x2bd   :  { %2196 = vmatmul.mubr.msk.f32.vlgmr.msra.gmra.mxu0 %vm313_vm3, %v306_v42  ;;  %2210 = vmatpush3.msra.mxu1 %v2693_v28 }
 0x2be   :  { %2225 = vmatpush3.msra.mxu0 %v2620_v1  ;;  %2232 = vmatprep.mubr.msk.f32.mxu0 %vm2552_vm1, %v2551_v3 }
 0x2bf   :  { %2226 = vmatprep.subr.mxu0 %v2551_v3  ;;  %2211 = vmatprep.subr.mxu1 %v2551_v3 }
 0x2c0   :  { %2227 = vmatpush3.msra.mxu0 %v2633_v5  ;;  %2212 = vmatpush3.msra.mxu1 %v2703_v30 }
 0x2c1   :  { %2228 = vmatprep.subr.mxu0 %v2551_v3  ;;  %2213 = vmatprep.subr.mxu1 %v2551_v3 }
 0x2c2   :  { %2229 = vmatpush3.msra.mxu0 %v2643_v7  ;;  %2214 = vmatpush3.msra.mxu1 %v2710_v31 }
 0x2c3   :  { %2230 = vmatprep.subr.mxu0 %v2551_v3  ;;  %2215 = vmatprep.subr.mxu1 %v2551_v3 }
 0x2c4   :  { %2231 = vmatpush3.msra.mxu0 %v2651_v8  ;;  %2216 = vmatpush3.msra.mxu1 %v2724_v34 }
 0x2c5   :  { %2217 = vmatprep.subr.mxu1 %v2551_v3  ;;  %2221 = vmatprep.mubr.msk.f32.mxu1 %vm2552_vm1, %v2551_v3 }
 0x2c6   :  { %2218 = vmatpush3.msra.mxu1 %v2732_v35  ;;  %2235 = vmatprep.subr.mxu0 %v2551_v3 }
 0x2c7   :  { %2219 = vmatprep.subr.mxu1 %v2551_v3 }
 0x2c8   :  { %2220 = vmatpush3.msra.mxu1 %v2749_v38 }
 0x2c9   :  { %2250 = vmatprep.subr.mxu1 %v2551_v3 }
 0x37c   :  { %v481_v50 = vpop.f32.mrf.mxu1 }
 0x37d   :  { %v485_v51 = vadd.f32 %v481_v50, %v161_v49  ;;  %v383_v52 = vpop.f32.mrf.mxu0 }
 0x37e   :  { %v2208_v53 = vpop.f32.mrf.mxu1  ;;  %v384_v4 = vadd.f32 %v2801_v63, %v383_v52 }
 0x37f   :  { %2408 = vtanh.f32 %v485_v51  ;;  %v2197_v54 = vpop.f32.mrf.mxu0  ;;  %v2014_v56 = vmul.f32 -1.442695, %v485_v51 }
 0x380   :  { %v2012_v11 = vmul.f32 -1.442695, %v384_v4 }
 0x381   :  { %2410 = vpow2.f32 %v2014_v56 }
 0x38c   :  { %v2409_v55 = vpop.eup %2408 }
 0x38d   :  { %495 = vrot.lane.b32.xlu0 %v2409_v55, %s2553_s29 }
 0x38e   :  { %v2411_v57 = vpop.eup %2410 }
 0x38f   :  { %v489_v58 = vadd.f32 1.0, %v2411_v57 }
 0x391   :  { %2412 = vrcp.f32 %v489_v58 }
 0x39e   :  { %v2413_v59 = vpop.eup %2412 }
 0x39f   :  { %v493_v62 = vmul.f32 %v2413_v59, %v2681_v25 }
 0x3ff   :  { %v496_v60 = vpop.permute.xlu0 %495 }
 0x400   :  { %v498_v61 = vmul.f32 %v2413_v59, %v496_v60 }
 0x402   :  { %500 = vrot.lane.b32.xlu1 %v498_v61, %s2553_s29 }
 0x474   :  { %v501_v0 = vpop.permute.xlu1 %500 }
 0x475   :  { %v2803_v2 = vadd.f32 %v501_v0, %v493_v62 }
 0x477   :  { %2414 = vtanh.f32 %v2803_v2 }
 0x478   :  { %2416 = vtanh.f32 %v384_v4 }
 0x479   :  { %2418 = vpow2.f32 %v2012_v11 }
 0x484   :  { %v2415_v6 = vpop.eup %2414 }
 0x485   :  { %506 = vrot.lane.b32.xlu0 %v2415_v6, %s2553_s29  ;;  %v2417_v9 = vpop.eup %2416 }
 0x486   :  { %v2419_v12 = vpop.eup %2418 }
 0x487   :  { %v390_v13 = vadd.f32 1.0, %v2419_v12 }
 0x489   :  { %396 = vrot.lane.b32.xlu0 %v2417_v9, %s2555_s14  ;;  %2420 = vrcp.f32 %v390_v13  ;;  %v171_v13 = vadd.f32 %v2781_v43, %v2676_v10 }
 0x496   :  { %v2421_v16 = vpop.eup %2420 }
 0x497   :  { %v394_v23 = vmul.f32 0.0, %v2421_v16 }
 0x4f7   :  { %v507_v14 = vpop.permute.xlu0 %506 }
 0x4f8   :  { %v509_v15 = vmul.f32 %v2413_v59, %v507_v14 }
 0x4fa   :  { %511 = vrot.lane.b32.xlu1 %v509_v15, %s2554_s0 }
 0x4fb   :  { %v397_v17 = vpop.permute.xlu0 %396 }
 0x4fc   :  { %v399_v18 = vmul.f32 %v2421_v16, %v397_v17 }
 0x4fe   :  { %401 = vrot.lane.b32.xlu1 %v399_v18, %s2556_s5 }
 0x56c   :  { %v512_v19 = vpop.permute.xlu1 %511 }
 0x56d   :  { %2233 = vmatmul.mubr.msk.f32.vlgmr.msra.gmra.mxu0 %vm203_vm2, %v512_v19 }
 0x56e   :  { %2236 = vmatpush3.msra.mxu0 %v2693_v28  ;;  %2247 = vmatprep.mubr.msk.f32.mxu0 %vm2552_vm1, %v2551_v3 }
 0x56f   :  { %2237 = vmatprep.subr.mxu0 %v2551_v3 }
 0x570   :  { %2238 = vmatpush3.msra.mxu0 %v2703_v30  ;;  %v402_v21 = vpop.permute.xlu1 %401 }
 0x571   :  { %2239 = vmatprep.subr.mxu0 %v2551_v3  ;;  %v2828_v26 = vadd.f32 %v402_v21, %v394_v23 }
 0x572   :  { %2240 = vmatpush3.msra.mxu0 %v2710_v31 }
 0x573   :  { %2241 = vmatprep.subr.mxu0 %v2551_v3 }
 0x574   :  { %2242 = vmatpush3.msra.mxu0 %v2724_v34 }
 0x575   :  { %2243 = vmatprep.subr.mxu0 %v2551_v3 }
 0x576   :  { %2244 = vmatpush3.msra.mxu0 %v2732_v35 }
 0x577   :  { %2245 = vmatprep.subr.mxu0 %v2551_v3 }
 0x578   :  { %2246 = vmatpush3.msra.mxu0 %v2749_v38 }
 0x579   :  { %2276 = vmatprep.subr.mxu0 %v2551_v3 }
 0x62d   :  { %v682_v22 = vpop.f32.mrf.mxu0 }
 0x62e   :  { %v686_v24 = vadd.f32 %v682_v22, %v166_v20 }
 0x62f   :  { %v2234_v25 = vpop.f32.mrf.mxu0 }
 0x630   :  { %2422 = vtanh.f32 %v686_v24  ;;  %v2018_v32 = vmul.f32 -1.442695, %v686_v24 }
 0x631   :  { %2424 = vtanh.f32 %v2828_v26 }
 0x632   :  { %2426 = vpow2.f32 %v2018_v32 }
 0x63d   :  { %v2423_v27 = vpop.eup %2422 }
 0x63e   :  { %696 = vrot.lane.b32.xlu0 %v2423_v27, %s2553_s29  ;;  %v2425_v29 = vpop.eup %2424 }
 0x63f   :  { %v2427_v33 = vpop.eup %2426 }
 0x640   :  { %v690_v36 = vadd.f32 1.0, %v2427_v33 }
 0x642   :  { %407 = vrot.lane.b32.xlu0 %v2425_v29, %s2556_s5  ;;  %2428 = vrcp.f32 %v690_v36 }
 0x64f   :  { %v2429_v37 = vpop.eup %2428 }
 0x650   :  { %v694_v49 = vmul.f32 %v2429_v37, %v2803_v2 }
 0x6b0   :  { %v697_v39 = vpop.permute.xlu0 %696 }
 0x6b1   :  { %v699_v40 = vmul.f32 %v2429_v37, %v697_v39 }
 0x6b3   :  { %701 = vrot.lane.b32.xlu1 %v699_v40, %s2553_s29 }
 0x6b4   :  { %v408_v41 = vpop.permute.xlu0 %407 }
 0x6b5   :  { %v410_v42 = vmul.f32 %v2421_v16, %v408_v41 }
 0x6b7   :  { %v514_v44 = vsel %vm203_vm2, %v512_v19, %v410_v42 }
 0x6b8   :  { %2222 = vmatmul.mubr.msk.f32.vlgmr.msra.gmra.mxu1 %vm313_vm3, %v514_v44 }
 0x6b9   :  { %2251 = vmatpush3.msra.mxu1 %v2620_v1  ;;  %2258 = vmatprep.mubr.msk.f32.mxu1 %vm2552_vm1, %v2551_v3 }
 0x6ba   :  { %2252 = vmatprep.subr.mxu1 %v2551_v3 }
 0x6bb   :  { %2253 = vmatpush3.msra.mxu1 %v2633_v5 }
 0x6bc   :  { %2254 = vmatprep.subr.mxu1 %v2551_v3 }
 0x6bd   :  { %2255 = vmatpush3.msra.mxu1 %v2643_v7 }
 0x6be   :  { %2256 = vmatprep.subr.mxu1 %v2551_v3 }
 0x6bf   :  { %2257 = vmatpush3.msra.mxu1 %v2651_v8 }
 0x6c0   :  { %2261 = vmatprep.subr.mxu1 %v2551_v3 }
 0x725   :  { %v702_v50 = vpop.permute.xlu1 %701 }
 0x726   :  { %v2847_v51 = vadd.f32 %v702_v50, %v694_v49 }
 0x728   :  { %2430 = vtanh.f32 %v2847_v51 }
 0x735   :  { %v2431_v52 = vpop.eup %2430 }
 0x736   :  { %707 = vrot.lane.b32.xlu1 %v2431_v52, %s2553_s29 }
 0x778   :  { %v584_v53 = vpop.f32.mrf.mxu1 }
 0x779   :  { %v585_v54 = vadd.f32 %v2801_v63, %v584_v53 }
 0x77a   :  { %v2223_v55 = vpop.f32.mrf.mxu1 }
 0x77b   :  { %2432 = vtanh.f32 %v585_v54  ;;  %v2016_v59 = vmul.f32 -1.442695, %v585_v54 }
 0x77d   :  { %2434 = vpow2.f32 %v2016_v59 }
 0x788   :  { %v2433_v56 = vpop.eup %2432 }
 0x789   :  { %597 = vrot.lane.b32.xlu1 %v2433_v56, %s2555_s14 }
 0x78a   :  { %v2435_v60 = vpop.eup %2434 }
 0x78b   :  { %v591_v61 = vadd.f32 1.0, %v2435_v60 }
 0x78d   :  { %2436 = vrcp.f32 %v591_v61  ;;  %v176_v61 = vadd.f32 %v2676_v10, %v2787_v46 }
 0x79a   :  { %v2437_v62 = vpop.eup %2436 }
 0x79b   :  { %v595_v6 = vmul.f32 %v2437_v62, %v2828_v26 }
 0x7a8   :  { %v708_v57 = vpop.permute.xlu1 %707 }
 0x7a9   :  { %v710_v58 = vmul.f32 %v2429_v37, %v708_v57 }
 0x7ab   :  { %712 = vrot.lane.b32.xlu0 %v710_v58, %s2554_s0 }
 0x7fb   :  { %v598_v0 = vpop.permute.xlu1 %597 }
 0x7fc   :  { %v600_v2 = vmul.f32 %v2437_v62, %v598_v0 }
 0x7fe   :  { %602 = vrot.lane.b32.xlu0 %v600_v2, %s2556_s5 }
 0x81d   :  { %v713_v4 = vpop.permute.xlu0 %712 }
 0x81e   :  { %2259 = vmatmul.mubr.msk.f32.vlgmr.msra.gmra.mxu1 %vm203_vm2, %v713_v4 }
 0x81f   :  { %2262 = vmatpush3.msra.mxu1 %v2693_v28  ;;  %2273 = vmatprep.mubr.msk.f32.mxu1 %vm2552_vm1, %v2551_v3 }
 0x820   :  { %2263 = vmatprep.subr.mxu1 %v2551_v3 }
 0x821   :  { %2264 = vmatpush3.msra.mxu1 %v2703_v30 }
 0x822   :  { %2265 = vmatprep.subr.mxu1 %v2551_v3 }
 0x823   :  { %2266 = vmatpush3.msra.mxu1 %v2710_v31 }
 0x824   :  { %2267 = vmatprep.subr.mxu1 %v2551_v3 }
 0x825   :  { %2268 = vmatpush3.msra.mxu1 %v2724_v34 }
 0x826   :  { %2269 = vmatprep.subr.mxu1 %v2551_v3 }
 0x827   :  { %2270 = vmatpush3.msra.mxu1 %v2732_v35 }
 0x828   :  { %2271 = vmatprep.subr.mxu1 %v2551_v3 }
 0x829   :  { %2272 = vmatpush3.msra.mxu1 %v2749_v38 }
 0x82a   :  { %2302 = vmatprep.subr.mxu1 %v2551_v3 }
 0x870   :  { %v603_v9 = vpop.permute.xlu0 %602 }
 0x871   :  { %v605_v11 = vadd.f32 %v603_v9, %v595_v6 }
 0x873   :  { %2438 = vtanh.f32 %v605_v11 }
 0x880   :  { %v2439_v12 = vpop.eup %2438 }
 0x881   :  { %608 = vrot.lane.b32.xlu0 %v2439_v12, %s2556_s5 }
 0x8de   :  { %v883_v14 = vpop.f32.mrf.mxu1 }
 0x8df   :  { %v887_v15 = vadd.f32 %v883_v14, %v171_v13 }
 0x8e0   :  { %v2260_v16 = vpop.f32.mrf.mxu1 }
 0x8e1   :  { %2440 = vtanh.f32 %v887_v15  ;;  %v2022_v43 = vmul.f32 -1.442695, %v887_v15 }
 0x8e3   :  { %2442 = vpow2.f32 %v2022_v43 }
 0x8ee   :  { %v2441_v17 = vpop.eup %2440 }
 0x8ef   :  { %897 = vrot.lane.b32.xlu1 %v2441_v17, %s2553_s29 }
 0x8f0   :  { %v2443_v21 = vpop.eup %2442 }
 0x8f1   :  { %v891_v22 = vadd.f32 1.0, %v2443_v21 }
 0x8f3   :  { %v609_v18 = vpop.permute.xlu0 %608  ;;  %2444 = vrcp.f32 %v891_v22 }
 0x8f4   :  { %v611_v19 = vmul.f32 %v2437_v62, %v609_v18 }
 0x8f6   :  { %v715_v20 = vsel %vm203_vm2, %v713_v4, %v611_v19 }
 0x8f7   :  { %2248 = vmatmul.mubr.msk.f32.vlgmr.msra.gmra.mxu0 %vm313_vm3, %v715_v20 }
 0x8f8   :  { %2277 = vmatpush3.msra.mxu0 %v2620_v1  ;;  %2284 = vmatprep.mubr.msk.f32.mxu0 %vm2552_vm1, %v2551_v3 }
 0x8f9   :  { %2278 = vmatprep.subr.mxu0 %v2551_v3 }
 0x8fa   :  { %2279 = vmatpush3.msra.mxu0 %v2633_v5 }
 0x8fb   :  { %2280 = vmatprep.subr.mxu0 %v2551_v3 }
 0x8fc   :  { %2281 = vmatpush3.msra.mxu0 %v2643_v7 }
 0x8fd   :  { %2282 = vmatprep.subr.mxu0 %v2551_v3 }
 0x8fe   :  { %2283 = vmatpush3.msra.mxu0 %v2651_v8 }
 0x8ff   :  { %2287 = vmatprep.subr.mxu0 %v2551_v3 }
 0x900   :  { %v2445_v23 = vpop.eup %2444 }
 0x901   :  { %v895_v29 = vmul.f32 %v2445_v23, %v2847_v51 }
 0x961   :  { %v898_v24 = vpop.permute.xlu1 %897 }
 0x962   :  { %v900_v25 = vmul.f32 %v2445_v23, %v898_v24 }
 0x964   :  { %902 = vrot.lane.b32.xlu1 %v900_v25, %s2553_s29 }
 0x9b7   :  { %v785_v26 = vpop.f32.mrf.mxu0 }
 0x9b8   :  { %v786_v36 = vadd.f32 %v2801_v63, %v785_v26 }
 0x9b9   :  { %v2249_v27 = vpop.f32.mrf.mxu0 }
 0x9ba   :  { %v2020_v40 = vmul.f32 -1.442695, %v786_v36 }
 0x9d6   :  { %v903_v32 = vpop.permute.xlu1 %902 }
 0x9d7   :  { %v2889_v33 = vadd.f32 %v903_v32, %v895_v29 }
 0x9d9   :  { %2446 = vtanh.f32 %v2889_v33 }
 0x9da   :  { %2448 = vtanh.f32 %v786_v36 }
 0x9db   :  { %2450 = vpow2.f32 %v2020_v40 }
 0x9e6   :  { %v2447_v37 = vpop.eup %2446 }
 0x9e7   :  { %908 = vrot.lane.b32.xlu0 %v2447_v37, %s2553_s29  ;;  %v2449_v39 = vpop.eup %2448 }
 0x9e8   :  { %v2451_v41 = vpop.eup %2450 }
 0x9e9   :  { %v792_v42 = vadd.f32 1.0, %v2451_v41 }
 0x9eb   :  { %798 = vrot.lane.b32.xlu0 %v2449_v39, %s2555_s14  ;;  %2452 = vrcp.f32 %v792_v42 }
 0x9f8   :  { %v2453_v50 = vpop.eup %2452 }
 0x9f9   :  { %v796_v54 = vmul.f32 %v2453_v50, %v605_v11 }
 0xa59   :  { %v909_v44 = vpop.permute.xlu0 %908 }
 0xa5a   :  { %v911_v49 = vmul.f32 %v2445_v23, %v909_v44  ;;  %v181_v44 = vadd.f32 %v2785_v45, %v2676_v10 }
 0xa5c   :  { %913 = vrot.lane.b32.xlu1 %v911_v49, %s2554_s0 }
 0xa5d   :  { %v799_v51 = vpop.permute.xlu0 %798 }
 0xa5e   :  { %v801_v52 = vmul.f32 %v2453_v50, %v799_v51 }
 0xa60   :  { %803 = vrot.lane.b32.xlu1 %v801_v52, %s2556_s5 }
 0xace   :  { %v914_v53 = vpop.permute.xlu1 %913 }
 0xacf   :  { %2285 = vmatmul.mubr.msk.f32.vlgmr.msra.gmra.mxu0 %vm203_vm2, %v914_v53 }
 0xad0   :  { %2288 = vmatpush3.msra.mxu0 %v2693_v28  ;;  %2299 = vmatprep.mubr.msk.f32.mxu0 %vm2552_vm1, %v2551_v3 }
 0xad1   :  { %2289 = vmatprep.subr.mxu0 %v2551_v3 }
 0xad2   :  { %v804_v55 = vpop.permute.xlu1 %803  ;;  %2290 = vmatpush3.msra.mxu0 %v2703_v30 }
 0xad3   :  { %v2903_v56 = vadd.f32 %v804_v55, %v796_v54  ;;  %2291 = vmatprep.subr.mxu0 %v2551_v3 }
 0xad4   :  { %2292 = vmatpush3.msra.mxu0 %v2710_v31 }
 0xad5   :  { %2454 = vtanh.f32 %v2903_v56  ;;  %2293 = vmatprep.subr.mxu0 %v2551_v3 }
 0xad6   :  { %2294 = vmatpush3.msra.mxu0 %v2724_v34 }
 0xad7   :  { %2295 = vmatprep.subr.mxu0 %v2551_v3 }
 0xad8   :  { %2296 = vmatpush3.msra.mxu0 %v2732_v35 }
 0xad9   :  { %2297 = vmatprep.subr.mxu0 %v2551_v3 }
 0xada   :  { %2298 = vmatpush3.msra.mxu0 %v2749_v38 }
 0xadb   :  { %2328 = vmatprep.subr.mxu0 %v2551_v3 }
 0xae2   :  { %v2455_v57 = vpop.eup %2454 }
 0xae3   :  { %809 = vrot.lane.b32.xlu0 %v2455_v57, %s2556_s5 }
 0xb55   :  { %v810_v58 = vpop.permute.xlu0 %809 }
 0xb56   :  { %v812_v59 = vmul.f32 %v2453_v50, %v810_v58 }
 0xb58   :  { %v916_v60 = vsel %vm203_vm2, %v914_v53, %v812_v59 }
 0xb59   :  { %2274 = vmatmul.mubr.msk.f32.vlgmr.msra.gmra.mxu1 %vm313_vm3, %v916_v60 }
 0xb5a   :  { %2303 = vmatpush3.msra.mxu1 %v2620_v1  ;;  %2310 = vmatprep.mubr.msk.f32.mxu1 %vm2552_vm1, %v2551_v3 }
 0xb5b   :  { %2304 = vmatprep.subr.mxu1 %v2551_v3 }
 0xb5c   :  { %2305 = vmatpush3.msra.mxu1 %v2633_v5 }
 0xb5d   :  { %2306 = vmatprep.subr.mxu1 %v2551_v3 }
 0xb5e   :  { %2307 = vmatpush3.msra.mxu1 %v2643_v7 }
 0xb5f   :  { %2308 = vmatprep.subr.mxu1 %v2551_v3 }
 0xb60   :  { %2309 = vmatpush3.msra.mxu1 %v2651_v8 }
 0xb61   :  { %2313 = vmatprep.subr.mxu1 %v2551_v3 }
 0xb8f   :  { %v1084_v62 = vpop.f32.mrf.mxu0 }
 0xb90   :  { %v1088_v0 = vadd.f32 %v1084_v62, %v176_v61 }
 0xb91   :  { %v2286_v2 = vpop.f32.mrf.mxu0 }
 0xb92   :  { %2456 = vtanh.f32 %v1088_v0  ;;  %v2026_v6 = vmul.f32 -1.442695, %v1088_v0 }
 0xb94   :  { %2458 = vpow2.f32 %v2026_v6 }
 0xb9f   :  { %v2457_v4 = vpop.eup %2456 }
 0xba0   :  { %1098 = vrot.lane.b32.xlu1 %v2457_v4, %s2553_s29 }
 0xba1   :  { %v2459_v9 = vpop.eup %2458 }
 0xba2   :  { %v1092_v11 = vadd.f32 1.0, %v2459_v9 }
 0xba4   :  { %2460 = vrcp.f32 %v1092_v11 }
 0xbb1   :  { %v2461_v12 = vpop.eup %2460 }
 0xbb2   :  { %v1096_v46 = vmul.f32 %v2461_v12, %v2889_v33 }
 0xc12   :  { %v1099_v13 = vpop.permute.xlu1 %1098 }
 0xc13   :  { %v1101_v14 = vmul.f32 %v2461_v12, %v1099_v13 }
 0xc15   :  { %1103 = vrot.lane.b32.xlu0 %v1101_v14, %s2553_s29 }
 0xc19   :  { %v986_v15 = vpop.f32.mrf.mxu1 }
 0xc1a   :  { %v987_v19 = vadd.f32 %v2801_v63, %v986_v15 }
 0xc1b   :  { %v2275_v16 = vpop.f32.mrf.mxu1 }
 0xc1c   :  { %v2024_v21 = vmul.f32 -1.442695, %v987_v19 }
 0xc87   :  { %v1104_v17 = vpop.permute.xlu0 %1103 }
 0xc88   :  { %v2933_v18 = vadd.f32 %v1104_v17, %v1096_v46 }
 0xc8a   :  { %2462 = vtanh.f32 %v2933_v18 }
 0xc8b   :  { %2464 = vtanh.f32 %v987_v19 }
 0xc8c   :  { %2466 = vpow2.f32 %v2024_v21 }
 0xc97   :  { %v2463_v20 = vpop.eup %2462 }
 0xc98   :  { %1109 = vrot.lane.b32.xlu1 %v2463_v20, %s2553_s29  ;;  %v2465_v43 = vpop.eup %2464 }
 0xc99   :  { %v2467_v22 = vpop.eup %2466 }
 0xc9a   :  { %v993_v23 = vadd.f32 1.0, %v2467_v22 }
 0xc9c   :  { %999 = vrot.lane.b32.xlu1 %v2465_v43, %s2555_s14  ;;  %2468 = vrcp.f32 %v993_v23 }
 0xca9   :  { %v2469_v26 = vpop.eup %2468 }
 0xcaa   :  { %v997_v33 = vmul.f32 %v2469_v26, %v2903_v56 }
 0xd0a   :  { %v1110_v24 = vpop.permute.xlu1 %1109 }
 0xd0b   :  { %v1112_v25 = vmul.f32 %v2461_v12, %v1110_v24 }
 0xd0d   :  { %1114 = vrot.lane.b32.xlu0 %v1112_v25, %s2554_s0 }
 0xd0e   :  { %v1000_v27 = vpop.permute.xlu1 %999 }
 0xd0f   :  { %v1002_v29 = vmul.f32 %v2469_v26, %v1000_v27 }
 0xd11   :  { %1004 = vrot.lane.b32.xlu0 %v1002_v29, %s2556_s5 }
 0xd7f   :  { %v1115_v32 = vpop.permute.xlu0 %1114 }
 0xd80   :  { %2311 = vmatmul.mubr.msk.f32.vlgmr.msra.gmra.mxu1 %vm203_vm2, %v1115_v32 }
 0xd81   :  { %2314 = vmatpush3.msra.mxu1 %v2693_v28  ;;  %2325 = vmatprep.mubr.msk.f32.mxu1 %vm2552_vm1, %v2551_v3 }
 0xd82   :  { %2315 = vmatprep.subr.mxu1 %v2551_v3 }
 0xd83   :  { %v1005_v36 = vpop.permute.xlu0 %1004  ;;  %2316 = vmatpush3.msra.mxu1 %v2703_v30 }
 0xd84   :  { %v2948_v37 = vadd.f32 %v1005_v36, %v997_v33  ;;  %2317 = vmatprep.subr.mxu1 %v2551_v3 }
 0xd85   :  { %2318 = vmatpush3.msra.mxu1 %v2710_v31 }
 0xd86   :  { %2470 = vtanh.f32 %v2948_v37  ;;  %2319 = vmatprep.subr.mxu1 %v2551_v3 }
 0xd87   :  { %2320 = vmatpush3.msra.mxu1 %v2724_v34 }
 0xd88   :  { %2321 = vmatprep.subr.mxu1 %v2551_v3 }
 0xd89   :  { %2322 = vmatpush3.msra.mxu1 %v2732_v35 }
 0xd8a   :  { %2323 = vmatprep.subr.mxu1 %v2551_v3 }
 0xd8b   :  { %2324 = vmatpush3.msra.mxu1 %v2749_v38 }
 0xd8c   :  { %2354 = vmatprep.subr.mxu1 %v2551_v3 }
 0xd93   :  { %v2471_v39 = vpop.eup %2470 }
 0xd94   :  { %1010 = vrot.lane.b32.xlu1 %v2471_v39, %s2556_s5 }
 0xe06   :  { %v1011_v40 = vpop.permute.xlu1 %1010 }
 0xe07   :  { %v1013_v41 = vmul.f32 %v2469_v26, %v1011_v40 }
 0xe09   :  { %v1117_v42 = vsel %vm203_vm2, %v1115_v32, %v1013_v41 }
 0xe0a   :  { %2300 = vmatmul.mubr.msk.f32.vlgmr.msra.gmra.mxu0 %vm313_vm3, %v1117_v42 }
 0xe0b   :  { %2329 = vmatpush3.msra.mxu0 %v2620_v1  ;;  %2336 = vmatprep.mubr.msk.f32.mxu0 %vm2552_vm1, %v2551_v3 }
 0xe0c   :  { %2330 = vmatprep.subr.mxu0 %v2551_v3 }
 0xe0d   :  { %2331 = vmatpush3.msra.mxu0 %v2633_v5 }
 0xe0e   :  { %2332 = vmatprep.subr.mxu0 %v2551_v3 }
 0xe0f   :  { %2333 = vmatpush3.msra.mxu0 %v2643_v7 }
 0xe10   :  { %2334 = vmatprep.subr.mxu0 %v2551_v3 }
 0xe11   :  { %2335 = vmatpush3.msra.mxu0 %v2651_v8 }
 0xe12   :  { %2339 = vmatprep.subr.mxu0 %v2551_v3 }
 0xe40   :  { %v1285_v49 = vpop.f32.mrf.mxu1 }
 0xe41   :  { %v1289_v50 = vadd.f32 %v1285_v49, %v181_v44 }
 0xe42   :  { %v2312_v51 = vpop.f32.mrf.mxu1 }
 0xe43   :  { %2472 = vtanh.f32 %v1289_v50  ;;  %v2030_v53 = vmul.f32 -1.442695, %v1289_v50 }
 0xe45   :  { %2474 = vpow2.f32 %v2030_v53 }
 0xe50   :  { %v2473_v52 = vpop.eup %2472 }
 0xe51   :  { %1299 = vrot.lane.b32.xlu0 %v2473_v52, %s2553_s29 }
 0xe52   :  { %v2475_v54 = vpop.eup %2474 }
 0xe53   :  { %v1293_v55 = vadd.f32 1.0, %v2475_v54 }
 0xe55   :  { %2476 = vrcp.f32 %v1293_v55 }
 0xe62   :  { %v2477_v56 = vpop.eup %2476 }
 0xe63   :  { %v1297_v0 = vmul.f32 %v2477_v56, %v2933_v18 }
 0xec3   :  { %v1300_v57 = vpop.permute.xlu0 %1299 }
 0xec4   :  { %v1302_v58 = vmul.f32 %v2477_v56, %v1300_v57 }
 0xec6   :  { %1304 = vrot.lane.b32.xlu1 %v1302_v58, %s2553_s29 }
 0xeca   :  { %v1187_v59 = vpop.f32.mrf.mxu0 }
 0xecb   :  { %v1188_v45 = vadd.f32 %v2801_v63, %v1187_v59 }
 0xecc   :  { %v2301_v60 = vpop.f32.mrf.mxu0 }
 0xecd   :  { %2478 = vtanh.f32 %v1188_v45  ;;  %v2028_v62 = vmul.f32 -1.442695, %v1188_v45 }
 0xecf   :  { %2480 = vpow2.f32 %v2028_v62 }
 0xeda   :  { %v2479_v61 = vpop.eup %2478 }
 0xedb   :  { %1200 = vrot.lane.b32.xlu1 %v2479_v61, %s2555_s14 }
 0xedc   :  { %v2481_v4 = vpop.eup %2480 }
 0xedd   :  { %v1194_v9 = vadd.f32 1.0, %v2481_v4 }
 0xf38   :  { %v1305_v2 = vpop.permute.xlu1 %1304 }
 0xf39   :  { %v2980_v6 = vadd.f32 %v1305_v2, %v1297_v0 }
 0xf3b   :  { %2482 = vtanh.f32 %v2980_v6 }
 0xf3c   :  { %2484 = vrcp.f32 %v1194_v9 }
 0xf48   :  { %v2483_v11 = vpop.eup %2482 }
 0xf49   :  { %1310 = vrot.lane.b32.xlu0 %v2483_v11, %s2553_s29  ;;  %v2485_v12 = vpop.eup %2484 }
 0xf4a   :  { %v1198_v46 = vmul.f32 %v2485_v12, %v2948_v37 }
 0xf4d   :  { %v1201_v13 = vpop.permute.xlu1 %1200 }
 0xf4e   :  { %v1203_v14 = vmul.f32 %v2485_v12, %v1201_v13 }
 0xf50   :  { %1205 = vrot.lane.b32.xlu1 %v1203_v14, %s2556_s5 }
 0xfbb   :  { %v1311_v15 = vpop.permute.xlu0 %1310 }
 0xfbc   :  { %v1313_v16 = vmul.f32 %v2477_v56, %v1311_v15 }
 0xfbe   :  { %1315 = vrot.lane.b32.xlu0 %v1313_v16, %s2554_s0 }
 0xfc2   :  { %v1206_v17 = vpop.permute.xlu1 %1205 }
 0xfc3   :  { %v2987_v18 = vadd.f32 %v1206_v17, %v1198_v46 }
 0xfc5   :  { %2486 = vtanh.f32 %v2987_v18 }
 0xfd2   :  { %v2487_v19 = vpop.eup %2486 }
 0xfd3   :  { %1211 = vrot.lane.b32.xlu0 %v2487_v19, %s2556_s5 }
0x1030   :  { %v1316_v20 = vpop.permute.xlu0 %1315 }
0x1031   :  { %2337 = vmatmul.mubr.msk.f32.vlgmr.msra.gmra.mxu0 %vm203_vm2, %v1316_v20 }
0x1032   :  { %2340 = vmatpush3.msra.mxu0 %v2693_v28  ;;  %2351 = vmatprep.mubr.msk.f32.mxu0 %vm2552_vm1, %v2551_v3 }
0x1033   :  { %2341 = vmatprep.subr.mxu0 %v2551_v3 }
0x1034   :  { %2342 = vmatpush3.msra.mxu0 %v2703_v30 }
0x1035   :  { %2343 = vmatprep.subr.mxu0 %v2551_v3 }
0x1036   :  { %2344 = vmatpush3.msra.mxu0 %v2710_v31 }
0x1037   :  { %2345 = vmatprep.subr.mxu0 %v2551_v3 }
0x1038   :  { %2346 = vmatpush3.msra.mxu0 %v2724_v34 }
0x1039   :  { %2347 = vmatprep.subr.mxu0 %v2551_v3 }
0x103a   :  { %2348 = vmatpush3.msra.mxu0 %v2732_v35 }
0x103b   :  { %2349 = vmatprep.subr.mxu0 %v2551_v3 }
0x103c   :  { %2350 = vmatpush3.msra.mxu0 %v2749_v38 }
0x103d   :  { %2380 = vmatprep.subr.mxu0 %v2551_v3 }
0x1045   :  { %v1212_v43 = vpop.permute.xlu0 %1211 }
0x1046   :  { %v1214_v21 = vmul.f32 %v2485_v12, %v1212_v43 }
0x1048   :  { %v1318_v22 = vsel %vm203_vm2, %v1316_v20, %v1214_v21 }
0x1049   :  { %2326 = vmatmul.mubr.msk.f32.vlgmr.msra.gmra.mxu1 %vm313_vm3, %v1318_v22 }
0x104a   :  { %2355 = vmatpush3.msra.mxu1 %v2620_v1  ;;  %2362 = vmatprep.mubr.msk.f32.mxu1 %vm2552_vm1, %v2551_v3  ;;  %v186_v1 = vadd.f32 %v2676_v10, %v2791_v48 }
0x104b   :  { %2356 = vmatprep.subr.mxu1 %v2551_v3 }
0x104c   :  { %2357 = vmatpush3.msra.mxu1 %v2633_v5 }
0x104d   :  { %2358 = vmatprep.subr.mxu1 %v2551_v3 }
0x104e   :  { %2359 = vmatpush3.msra.mxu1 %v2643_v7 }
0x104f   :  { %2360 = vmatprep.subr.mxu1 %v2551_v3 }
0x1050   :  { %2361 = vmatpush3.msra.mxu1 %v2651_v8 }
0x1051   :  { %2365 = vmatprep.subr.mxu1 %v2551_v3 }
0x10f1   :  { %v1486_v23 = vpop.f32.mrf.mxu0 }
0x10f2   :  { %v1490_v24 = vadd.f32 %v1486_v23, %v186_v1 }
0x10f3   :  { %v2338_v25 = vpop.f32.mrf.mxu0 }
0x10f4   :  { %2488 = vtanh.f32 %v1490_v24  ;;  %v2034_v8 = vmul.f32 -1.442695, %v1490_v24 }
0x1101   :  { %v2489_v26 = vpop.eup %2488 }
0x1102   :  { %1500 = vrot.lane.b32.xlu1 %v2489_v26, %s2553_s29 }
0x1109   :  { %v1388_v5 = vpop.f32.mrf.mxu1 }
0x110a   :  { %v1389_v27 = vadd.f32 %v2801_v63, %v1388_v5 }
0x110b   :  { %v2327_v7 = vpop.f32.mrf.mxu1 }
0x110c   :  { %2490 = vtanh.f32 %v1389_v27  ;;  %v2032_v10 = vmul.f32 -1.442695, %v1389_v27 }
0x110d   :  { %2492 = vpow2.f32 %v2034_v8 }
0x1119   :  { %v2491_v29 = vpop.eup %2490 }
0x111a   :  { %1401 = vrot.lane.b32.xlu1 %v2491_v29, %s2555_s14  ;;  %v2493_v32 = vpop.eup %2492 }
0x111b   :  { %v1494_v33 = vadd.f32 1.0, %v2493_v32 }
0x111d   :  { %2494 = vrcp.f32 %v1494_v33 }
0x111e   :  { %2496 = vpow2.f32 %v2032_v10 }
0x112a   :  { %v2495_v48 = vpop.eup %2494 }
0x112b   :  { %v2497_v39 = vpop.eup %2496  ;;  %v1498_v49 = vmul.f32 %v2495_v48, %v2980_v6 }
0x112c   :  { %v1395_v40 = vadd.f32 1.0, %v2497_v39 }
0x112e   :  { %2498 = vrcp.f32 %v1395_v40 }
0x113b   :  { %v2499_v41 = vpop.eup %2498 }
0x113c   :  { %v1399_v53 = vmul.f32 %v2499_v41, %v2987_v18 }
0x1174   :  { %v1501_v36 = vpop.permute.xlu1 %1500 }
0x1175   :  { %v1503_v37 = vmul.f32 %v2495_v48, %v1501_v36 }
0x1177   :  { %1505 = vrot.lane.b32.xlu0 %v1503_v37, %s2553_s29 }
0x118c   :  { %v1402_v42 = vpop.permute.xlu1 %1401 }
0x118d   :  { %v1404_v44 = vmul.f32 %v2499_v41, %v1402_v42 }
0x118f   :  { %1406 = vrot.lane.b32.xlu1 %v1404_v44, %s2556_s5 }
0x11e9   :  { %v1506_v50 = vpop.permute.xlu0 %1505 }
0x11ea   :  { %v3026_v51 = vadd.f32 %v1506_v50, %v1498_v49  ;;  %v1818_v50 = vld [vmem:[%s3099_s6] sm:$0xff] }
0x11ec   :  { %2500 = vtanh.f32 %v3026_v51 }
0x11f9   :  { %v2501_v52 = vpop.eup %2500 }
0x11fa   :  { %1511 = vrot.lane.b32.xlu0 %v2501_v52, %s2553_s29 }
0x1201   :  { %v1407_v54 = vpop.permute.xlu1 %1406 }
0x1202   :  { %v1409_v55 = vadd.f32 %v1407_v54, %v1399_v53  ;;  %v1902_v54 = vld [vmem:[%s3101_s8] sm:$0xff]  ;;  %s2558_s8 = smov [#allocation3]  }
0x1203   :  { %s1992_s1 = sshll.u32 %s2558_s8, 4  ;;  %s1993_s1 = int_to_ptr.vmem [resolvable:$true] %s1992_s1 }
0x1204   :  { %2502 = vtanh.f32 %v1409_v55  ;;  %s2529_s25 = scalar_lea.vmem %s1993_s1, 128  ;;  %p2534_p1 = scmp.lt.s32.totalorder %s1993_s1, %s1993_s1 }
0x1205   :  { %p2530_p0 = scmp.ne.s32.totalorder %s1993_s1, %s2529_s25  ;;  %p2535_p2 = scmp.lt.s32.totalorder %s2529_s25, %s2529_s25 }
0x1207   :  { %p2536_p3 = por %p2535_p2, %p2534_p1 }
0x1209   :  { %p2537_p4 = pnand %p2536_p3, %p2530_p0 }
0x1211   :  { %v2503_v56 = vpop.eup %2502 }
0x1212   :  { %1412 = vrot.lane.b32.xlu1 %v2503_v56, %s2556_s5  ;;  %v2041_v56 = vld [vmem:[%s3100_s7] ss:$0 sm:$0xff] }
0x126c   :  { %v1512_v57 = vpop.permute.xlu0 %1511 }
0x126d   :  { %v1514_v58 = vmul.f32 %v2495_v48, %v1512_v57 }
0x126f   :  { %1516 = vrot.lane.b32.xlu0 %v1514_v58, %s2554_s0 }
0x1284   :  { %v1413_v59 = vpop.permute.xlu1 %1412 }
0x1285   :  { %v1415_v45 = vmul.f32 %v2499_v41, %v1413_v59 }
0x12e1   :  { %v1517_v60 = vpop.permute.xlu0 %1516 }
0x12e2   :  { %v1519_v61 = vsel %vm203_vm2, %v1517_v60, %v1415_v45  ;;  %2363 = vmatmul.mubr.msk.f32.vlgmr.msra.gmra.mxu1 %vm203_vm2, %v1517_v60  ;;  %v2043_v45 = vld [vmem:[%s3102_s9] ss:$0 sm:$0xff] }
0x12e3   :  { %2352 = vmatmul.mubr.msk.f32.vlgmr.msra.gmra.mxu0 %vm313_vm3, %v1519_v61  ;;  %2366 = vmatpush3.msra.mxu1 %v2693_v28  ;;  %v2528_v28 = vld [vmem:[%s3096_s3] ss:$0 sm:$0xff] }
0x12e4   :  { %2367 = vmatprep.subr.mxu1 %v2551_v3  ;;  %2377 = vmatprep.mubr.msk.f32.mxu1 %vm2552_vm1, %v2551_v3 }
0x12e5   :  { %2368 = vmatpush3.msra.mxu1 %v2703_v30  ;;  %2384 = vmatprep.mubr.msk.f32.mxu0 %vm2552_vm1, %v2551_v3  ;;  %v191_v30 = vadd.f32 %v2528_v28, %v2789_v47 }
0x12e6   :  { %2369 = vmatprep.subr.mxu1 %v2551_v3 }
0x12e7   :  { %2370 = vmatpush3.msra.mxu1 %v2710_v31 }
0x12e8   :  { %2371 = vmatprep.subr.mxu1 %v2551_v3 }
0x12e9   :  { %2372 = vmatpush3.msra.mxu1 %v2724_v34 }
0x12ea   :  { %2373 = vmatprep.subr.mxu1 %v2551_v3 }
0x12eb   :  { %2374 = vmatpush3.msra.mxu1 %v2732_v35 }
0x12ec   :  { %2375 = vmatprep.subr.mxu1 %v2551_v3 }
0x12ed   :  { %2376 = vmatpush3.msra.mxu1 %v2749_v38 }
0x13a2   :  { %v1687_v62 = vpop.f32.mrf.mxu1 }
0x13a3   :  { %v1691_v31 = vadd.f32 %v1687_v62, %v191_v30  ;;  %v1589_v0 = vpop.f32.mrf.mxu0 }
0x13a4   :  { %v1590_v2 = vadd.f32 %v2801_v63, %v1589_v0  ;;  %v2364_v34 = vpop.f32.mrf.mxu1 }
0x13a5   :  { %2504 = vtanh.f32 %v1691_v31  ;;  %v2353_v4 = vpop.f32.mrf.mxu0  ;;  %v2038_v38 = vmul.f32 -1.442695, %v1691_v31 }
0x13a6   :  { %2506 = vtanh.f32 %v1590_v2  ;;  %v2036_v9 = vmul.f32 -1.442695, %v1590_v2 }
0x13a7   :  { %2508 = vpow2.f32 %v2038_v38 }
0x13a8   :  { %2510 = vpow2.f32 %v2036_v9 }
0x13b2   :  { %v2505_v35 = vpop.eup %2504 }
0x13b3   :  { %v2507_v6 = vpop.eup %2506  ;;  %1701 = vrot.lane.b32.xlu0 %v2505_v35, %s2553_s29 }
0x13b4   :  { %1602 = vrot.lane.b32.xlu1 %v2507_v6, %s2555_s14  ;;  %v2509_v47 = vpop.eup %2508 }
0x13b5   :  { %v2511_v11 = vpop.eup %2510  ;;  %v1695_v12 = vadd.f32 1.0, %v2509_v47 }
0x13b6   :  { %v1596_v13 = vadd.f32 1.0, %v2511_v11 }
0x13b7   :  { %2512 = vrcp.f32 %v1695_v12 }
0x13b8   :  { %2514 = vrcp.f32 %v1596_v13 }
0x13c4   :  { %v2513_v14 = vpop.eup %2512 }
0x13c5   :  { %v2515_v16 = vpop.eup %2514  ;;  %v1699_v19 = vmul.f32 %v2513_v14, %v3026_v51 }
0x13c6   :  { %v1600_v43 = vmul.f32 %v2515_v16, %v1409_v55 }
0x1425   :  { %v1702_v15 = vpop.permute.xlu0 %1701 }
0x1426   :  { %v1704_v46 = vmul.f32 %v2513_v14, %v1702_v15  ;;  %v1603_v17 = vpop.permute.xlu1 %1602 }
0x1427   :  { %v1605_v18 = vmul.f32 %v2515_v16, %v1603_v17 }
0x1428   :  { %1706 = vrot.lane.b32.xlu0 %v1704_v46, %s2553_s29 }
0x1429   :  { %1607 = vrot.lane.b32.xlu1 %v1605_v18, %s2556_s5 }
0x149a   :  { %v1707_v20 = vpop.permute.xlu0 %1706 }
0x149b   :  { %v1709_v21 = vadd.f32 %v1707_v20, %v1699_v19  ;;  %v1608_v22 = vpop.permute.xlu1 %1607 }
0x149c   :  { %v1610_v1 = vadd.f32 %v1608_v22, %v1600_v43 }
0x149d   :  { %2516 = vtanh.f32 %v1709_v21 }
0x149e   :  { %2518 = vtanh.f32 %v1610_v1 }
0x14aa   :  { %v2517_v23 = vpop.eup %2516 }
0x14ab   :  { %v2519_v24 = vpop.eup %2518  ;;  %1712 = vrot.lane.b32.xlu0 %v2517_v23, %s2553_s29 }
0x14ac   :  { %1613 = vrot.lane.b32.xlu1 %v2519_v24, %s2556_s5 }
0x151d   :  { %v1713_v25 = vpop.permute.xlu0 %1712 }
0x151e   :  { %v1715_v26 = vmul.f32 %v2513_v14, %v1713_v25  ;;  %v1614_v5 = vpop.permute.xlu1 %1613 }
0x151f   :  { %v1616_v27 = vmul.f32 %v2515_v16, %v1614_v5 }
0x1520   :  { %1717 = vrot.lane.b32.xlu0 %v1715_v26, %s2554_s0 }
0x1592   :  { %v1718_v7 = vpop.permute.xlu0 %1717 }
0x1593   :  { %v1720_v29 = vsel %vm203_vm2, %v1718_v7, %v1616_v27 }
0x1594   :  { %2378 = vmatmul.mubr.msk.f32.vlgmr.msra.gmra.mxu1 %vm313_vm3, %v1720_v29 }
0x1654   :  { %v1790_v8 = vpop.f32.mrf.mxu1 }
0x1655   :  { %v1791_v32 = vadd.f32 %v2801_v63, %v1790_v8  ;;  %v1819_v63 = vld [vmem:[%s3099_s6 + $0x8] sm:$0xff] }
0x1656   :  { %v2379_v33 = vpop.f32.mrf.mxu1  ;;  %2381 = vmatpush3.msra.mxu0 %v1819_v63 }
0x1657   :  { %2520 = vtanh.f32 %v1791_v32  ;;  %v2040_v48 = vmul.f32 -1.442695, %v1791_v32  ;;  %2382 = vmatprep.subr.mxu0 %v2551_v3 }
0x1658   :  { %2383 = vmatpush3.msra.mxu0 %v1818_v50 }
0x1659   :  { %2522 = vpow2.f32 %v2040_v48  ;;  %2387 = vmatprep.subr.mxu0 %v2551_v3 }
0x1664   :  { %v2521_v10 = vpop.eup %2520 }
0x1665   :  { %1803 = vrot.lane.b32.xlu1 %v2521_v10, %s2555_s14 }
0x1666   :  { %v2523_v36 = vpop.eup %2522 }
0x1667   :  { %v1797_v37 = vadd.f32 1.0, %v2523_v36 }
0x1669   :  { %2524 = vrcp.f32 %v1797_v37 }
0x1676   :  { %v2525_v39 = vpop.eup %2524 }
0x1677   :  { %v1801_v42 = vmul.f32 %v2525_v39, %v1610_v1 }
0x16d7   :  { %v1804_v40 = vpop.permute.xlu1 %1803 }
0x16d8   :  { %v1806_v41 = vmul.f32 %v2525_v39, %v1804_v40 }
0x16da   :  { %1808 = vrot.lane.b32.xlu0 %v1806_v41, %s2556_s5 }
0x174c   :  { %v1809_v44 = vpop.permute.xlu0 %1808 }
0x174d   :  { %v1811_v49 = vadd.f32 %v1809_v44, %v1801_v42 }
0x174f   :  { %2526 = vtanh.f32 %v1811_v49 }
0x175c   :  { %v2527_v51 = vpop.eup %2526 }
0x175d   :  { %1814 = vrot.lane.b32.xlu1 %v2527_v51, %s2556_s5 }
0x17cf   :  { %v1815_v52 = vpop.permute.xlu1 %1814 }
0x17d0   :  { %v1817_v53 = vmul.f32 %v2525_v39, %v1815_v52 }
0x17d2   :  { %1828 = vrot.lane.b32.xlu0 %v1817_v53, %s2557_s19 }
0x1844   :  { %v1829_v55 = vpop.permute.xlu0 %1828 }
0x1845   :  { %2385 = vmatmul.mubr.msk.f32.vlgmr.msra.gmra.mxu0 %vm64_vm0, %v1829_v55 }
0x1846   :  { %2388 = vmatpush3.msra.mxu0 %v1902_v54  ;;  %2389 = vmatprep.mubr.msk.f32.mxu0 %vm2552_vm1, %v2551_v3 }
0x1905   :  { %v1898_v57 = vpop.f32.mrf.mxu0 }
0x1906   :  { %v1899_v58 = vadd.f32 %v2041_v56, %v1898_v57 }
0x1907   :  { %v2386_v59 = vpop.f32.mrf.mxu0 }
0x1908   :  { %2390 = vmatmul.mubr.msk.f32.vlgmr.msra.gmra.mxu0 %vm1910_vm4, %v1899_v58 }
0x19c8   :  { %v1980_v60 = vpop.f32.mrf.mxu0 }
0x19c9   :  { %v1981_v61 = vadd.f32 %v2043_v45, %v1980_v60 }
0x19ca   :  { %v2391_v3 = vpop.f32.mrf.mxu0 }
0x19cb   :  { %1985 = vst.msk [vmem:[#allocation3] sm:$0xff] %vm1984_vm5, %v1981_v61 }
0x19cc   :  { %2540 = shalt.err (!%p2537_p4)
}
0x19cd   :  { %1995 = dma.vmem_to_hbm [thread:$0]  %s1993_s1, 128, %s3103_s10, [#allocation4]  }
0x19ce   :  { %2549 = dma.done.wait [#allocation4], 128  }
0x19cf   :  { %2550 = vsyncadd [#allocation4], 4294967168 }
0x19d0   :  { %1999 = vsyncpa [#allocation4], 1 }

</bundles_post_ra>
